<compile_context>
chip_gen: v7x
topology: tpu7x:2x2x1
jax: 0.10.0
libtpu: 0.0.40
codegen_flags: <defaults>
</compile_context>

<pallas_src>
import jax
import jax.numpy as jnp
from jax.experimental import pallas as pl
from jax.experimental.pallas import tpu as pltpu

LN_EPS = 1e-5


def _round_up(x, m):
    return (x + m - 1) // m * m


def _downsample_kernel(x_ref, w_ref, b_ref, o_ref):
    # x_ref : (TH, 2, Wo, 2*C)  -- TH output rows; axis 1 = kh (top/bottom input
    #                              row); minor axis packs the kw=0 / kw=1 pixels.
    # w_ref : (4, C, Cout_p)    -- conv taps (kh, kw) row-major, gamma folded in,
    #                              bf16, Cout padded to a multiple of 128.
    # b_ref : (1, Cout_p)       -- conv bias with beta folded in (f32).
    # o_ref : (TH*Wo, Cout_p)   -- lane-dense 2-D output tile.
    th, _, wo, two_c = x_ref.shape
    c = two_c // 2
    cout_p = o_ref.shape[-1]

    acc = jnp.zeros((th * wo, cout_p), dtype=jnp.float32)
    for kh in range(2):
        slab = x_ref[:, kh, :, :].astype(jnp.float32)          # (TH, Wo, 2C)
        for kw in range(2):
            p = slab[:, :, kw * c:(kw + 1) * c]                 # (TH, Wo, C)
            # LayerNorm over channels (affine folded into w/b outside).
            mean = jnp.mean(p, axis=-1, keepdims=True)
            d = p - mean
            var = jnp.mean(d * d, axis=-1, keepdims=True)
            pn = d * jax.lax.rsqrt(var + LN_EPS)
            pn2 = pn.reshape(th * wo, c).astype(w_ref.dtype)    # bf16 to MXU
            acc = acc + jnp.dot(pn2, w_ref[2 * kh + kw],
                                preferred_element_type=jnp.float32)
    o_ref[...] = (acc + b_ref[...]).astype(o_ref.dtype)


def downsample(x_nchw, gamma, beta, w_hwio, bias, *, target_patch_rows=1024):
    """x_nchw: (B, C, H, W); returns (B, Cout, H//2, W//2)."""
    B, C, H, W = x_nchw.shape
    kh, kw, cin, cout = w_hwio.shape
    assert (kh, kw, cin) == (2, 2, C)
    assert H % 2 == 0 and W % 2 == 0
    Ho, Wo = H // 2, W // 2
    R = B * Ho  # number of output rows (grid unit is a block of output rows)

    # ---- fold LayerNorm affine into conv weight / bias (f32 math) -----------
    w32 = w_hwio.astype(jnp.float32)
    wf = (w32 * gamma.astype(jnp.float32)[None, None, :, None]).reshape(4, C, cout)
    bf = bias.astype(jnp.float32) + jnp.einsum(
        "c,kco->o", beta.astype(jnp.float32), w32.reshape(4, C, cout))

    # ---- pad Cout to a lane-dense multiple of 128 ----------------------------
    cout_p = _round_up(cout, 128)
    if cout_p != cout:
        wf = jnp.pad(wf, ((0, 0), (0, 0), (0, cout_p - cout)))
        bf = jnp.pad(bf, ((0, cout_p - cout),))
    wf = wf.astype(jnp.bfloat16)            # bf16 MXU inputs, f32 accumulation
    bf = bf.reshape(1, cout_p)

    # ---- glue: single NCHW->NHWC transpose + free reshape --------------------
    x_nhwc = jnp.transpose(x_nchw, (0, 2, 3, 1))
    x5 = x_nhwc.reshape(R, 2, Wo, 2 * C)    # row pairs; kw packed into minor dim

    # ---- choose tile rows (multiple of 16) under a v7x-safe VMEM budget ------
    th = max(16, min(_round_up(R, 16),
                     _round_up(max(1, target_patch_rows // max(Wo, 1)), 16)))
    if R >= 64:
        # keep >= ~4 grid steps so both v7x TensorCores get work
        th = min(th, max(16, _round_up((R + 3) // 4, 16)))

    in_itemsize = x_nchw.dtype.itemsize
    out_itemsize = x_nchw.dtype.itemsize

    def _vmem_estimate(th_):
        return (2 * th_ * 2 * Wo * 2 * C * in_itemsize      # double-buffered input
                + 2 * th_ * Wo * cout_p * out_itemsize      # double-buffered output
                + 4 * C * cout_p * 2                        # resident bf16 weight
                + cout_p * 4)                               # bias

    VMEM_BUDGET = 48 * 1024 * 1024
    while _vmem_estimate(th) > VMEM_BUDGET and th > 16:
        th = max(16, (th // 2) // 16 * 16)

    Rp = _round_up(R, th)
    if Rp != R:
        x5 = jnp.pad(x5, ((0, Rp - R), (0, 0), (0, 0), (0, 0)))
    grid = (Rp // th,)

    vmem_limit = int(min(56 * 1024 * 1024,
                         max(24 * 1024 * 1024,
                             _vmem_estimate(th) + 8 * 1024 * 1024)))

    out = pl.pallas_call(
        _downsample_kernel,
        out_shape=jax.ShapeDtypeStruct((Rp * Wo, cout_p), x_nchw.dtype),
        grid_spec=pltpu.PrefetchScalarGridSpec(
            num_scalar_prefetch=0,
            grid=grid,
            in_specs=[
                pl.BlockSpec((th, 2, Wo, 2 * C), lambda i: (i, 0, 0, 0)),
                pl.BlockSpec((4, C, cout_p), lambda i: (0, 0, 0)),
                pl.BlockSpec((1, cout_p), lambda i: (0, 0)),
            ],
            out_specs=pl.BlockSpec((th * Wo, cout_p), lambda i: (i, 0)),
        ),
        compiler_params=pltpu.CompilerParams(
            dimension_semantics=("parallel",),
            vmem_limit_bytes=vmem_limit,
        ),
    )(x5, wf, bf)

    # ---- glue: slice off padding, back to NCHW -------------------------------
    y = out[:R * Wo, :cout].reshape(B, Ho, Wo, cout)
    return jnp.transpose(y, (0, 3, 1, 2))


def downsample_reference(x_nchw, gamma, beta, w_hwio, bias):
    """Pure-JAX f32 reference matching the PyTorch module semantics."""
    xt = jnp.transpose(x_nchw, (0, 2, 3, 1)).astype(jnp.float32)
    mean = xt.mean(-1, keepdims=True)
    var = ((xt - mean) ** 2).mean(-1, keepdims=True)
    xn = (xt - mean) / jnp.sqrt(var + LN_EPS) * gamma + beta
    xn_nchw = jnp.transpose(xn, (0, 3, 1, 2))
    w_oihw = jnp.transpose(w_hwio, (3, 2, 0, 1))
    y = jax.lax.conv_general_dilated(
        xn_nchw, w_oihw, window_strides=(2, 2), padding="VALID",
        dimension_numbers=("NCHW", "OIHW", "NCHW"),
    )
    return y + bias[None, :, None, None]


if __name__ == "__main__":
    key = jax.random.PRNGKey(0)
    k_x, k_w, k_b, k_g, k_bt = jax.random.split(key, 5)

    B, C, H, W = 2, 4, 16, 16
    Cout = 8

    x = jax.random.normal(k_x, (B, C, H, W), dtype=jnp.float32)
    # Conv2d(C, Cout, kernel_size=2, stride=2) parameters (HWIO layout here).
    w = 0.1 * jax.random.normal(k_w, (2, 2, C, Cout), dtype=jnp.float32)
    b = 0.05 * jax.random.normal(k_b, (Cout,), dtype=jnp.float32)
    # LayerNorm(C) parameters.
    gamma = 1.0 + 0.1 * jax.random.normal(k_g, (C,), dtype=jnp.float32)
    beta = 0.1 * jax.random.normal(k_bt, (C,), dtype=jnp.float32)

    y = downsample(x, gamma, beta, w, b)
    y = jax.block_until_ready(y)

    y_ref = downsample_reference(x, gamma, beta, w, b)
    assert y.shape == (B, Cout, H // 2, W // 2), y.shape
    # bf16 MXU inputs (f32 accumulation) => loosened tolerance vs f32 reference.
    max_err = float(jnp.max(jnp.abs(y - y_ref)))
    assert jnp.allclose(y, y_ref, atol=2e-2, rtol=2e-2), max_err
    print("KERNEL_OK")
</pallas_src>

<mosaic_0001>
module attributes {stable_mosaic.version = 11 : i64} {
  func.func @_downsample_kernel(%arg0: i32, %arg1: memref<16x2x8x8xf32, #tpu.memory_space<vmem>>, %arg2: memref<4x4x128xbf16, #tpu.memory_space<vmem>>, %arg3: memref<1x128xf32, #tpu.memory_space<vmem>>, %arg4: memref<128x128xf32, #tpu.memory_space<vmem>>) attributes {dimension_semantics = [#tpu.dimension_semantics<parallel>], iteration_bounds = array<i64: 1>, scalar_prefetch = 0 : i64, scratch_operands = 0 : i64, tpu.core_type = #tpu.core_type<tc>, window_params = [{transform_indices = @transform_0, window_bounds = array<i64: 16, 2, 8, 8>}, {pipeline_mode = #tpu.pipeline_mode<synchronous>, transform_indices = @transform_1, window_bounds = array<i64: 4, 4, 128>}, {pipeline_mode = #tpu.pipeline_mode<synchronous>, transform_indices = @transform_2, window_bounds = array<i64: 1, 128>}, {transform_indices = @transform_3, window_bounds = array<i64: 128, 128>}]} {
    %cst = arith.constant 0.000000e+00 : f32
    %0 = vector.broadcast %cst : f32 to vector<128x128xf32>
    %c0 = arith.constant 0 : index
    %c0_0 = arith.constant 0 : index
    %c0_1 = arith.constant 0 : index
    %c0_2 = arith.constant 0 : index
    %1 = vector.load %arg1[%c0, %c0_0, %c0_1, %c0_2] : memref<16x2x8x8xf32, #tpu.memory_space<vmem>>, vector<16x1x8x8xf32>
    %2 = vector.shape_cast %1 : vector<16x1x8x8xf32> to vector<16x8x8xf32>
    %3 = vector.extract_strided_slice %2 {offsets = [0, 0, 0], sizes = [16, 8, 4], strides = [1, 1, 1]} : vector<16x8x8xf32> to vector<16x8x4xf32>
    %cst_3 = arith.constant dense<0.000000e+00> : vector<16x8xf32>
    %4 = vector.multi_reduction <add>, %3, %cst_3 [2] : vector<16x8x4xf32> to vector<16x8xf32>
    %5 = vector.shape_cast %4 : vector<16x8xf32> to vector<16x8x1xf32>
    %cst_4 = arith.constant 4.000000e+00 : f32
    %6 = vector.broadcast %cst_4 : f32 to vector<16x8x1xf32>
    %7 = arith.divf %5, %6 : vector<16x8x1xf32>
    %8 = vector.broadcast %7 : vector<16x8x1xf32> to vector<16x8x4xf32>
    %9 = arith.subf %3, %8 : vector<16x8x4xf32>
    %10 = arith.mulf %9, %9 : vector<16x8x4xf32>
    %cst_5 = arith.constant dense<0.000000e+00> : vector<16x8xf32>
    %11 = vector.multi_reduction <add>, %10, %cst_5 [2] : vector<16x8x4xf32> to vector<16x8xf32>
    %12 = vector.shape_cast %11 : vector<16x8xf32> to vector<16x8x1xf32>
    %cst_6 = arith.constant 4.000000e+00 : f32
    %13 = vector.broadcast %cst_6 : f32 to vector<16x8x1xf32>
    %14 = arith.divf %12, %13 : vector<16x8x1xf32>
    %cst_7 = arith.constant 9.99999974E-6 : f32
    %15 = vector.broadcast %cst_7 : f32 to vector<16x8x1xf32>
    %16 = arith.addf %14, %15 : vector<16x8x1xf32>
    %17 = math.rsqrt %16 : vector<16x8x1xf32>
    %18 = vector.broadcast %17 : vector<16x8x1xf32> to vector<16x8x4xf32>
    %19 = arith.mulf %9, %18 : vector<16x8x4xf32>
    %20 = vector.shape_cast %19 : vector<16x8x4xf32> to vector<128x4xf32>
    %21 = arith.truncf %20 : vector<128x4xf32> to vector<128x4xbf16>
    %c0_8 = arith.constant 0 : index
    %c0_9 = arith.constant 0 : index
    %c0_10 = arith.constant 0 : index
    %22 = vector.load %arg2[%c0_8, %c0_9, %c0_10] : memref<4x4x128xbf16, #tpu.memory_space<vmem>>, vector<1x4x128xbf16>
    %23 = vector.shape_cast %22 : vector<1x4x128xbf16> to vector<4x128xbf16>
    %cst_11 = arith.constant dense<0.000000e+00> : vector<128x128xf32>
    %24 = tpu.matmul %21, %23, %cst_11 {dimension_numbers = #tpu.dot_dimension_numbers<[1], [0], [0], [1], [0, 0, 1, 1], [], []>} : vector<128x4xbf16>, vector<4x128xbf16>, vector<128x128xf32> -> vector<128x128xf32>
    %25 = arith.addf %0, %24 : vector<128x128xf32>
    %26 = vector.extract_strided_slice %2 {offsets = [0, 0, 4], sizes = [16, 8, 4], strides = [1, 1, 1]} : vector<16x8x8xf32> to vector<16x8x4xf32>
    %cst_12 = arith.constant dense<0.000000e+00> : vector<16x8xf32>
    %27 = vector.multi_reduction <add>, %26, %cst_12 [2] : vector<16x8x4xf32> to vector<16x8xf32>
    %28 = vector.shape_cast %27 : vector<16x8xf32> to vector<16x8x1xf32>
    %cst_13 = arith.constant 4.000000e+00 : f32
    %29 = vector.broadcast %cst_13 : f32 to vector<16x8x1xf32>
    %30 = arith.divf %28, %29 : vector<16x8x1xf32>
    %31 = vector.broadcast %30 : vector<16x8x1xf32> to vector<16x8x4xf32>
    %32 = arith.subf %26, %31 : vector<16x8x4xf32>
    %33 = arith.mulf %32, %32 : vector<16x8x4xf32>
    %cst_14 = arith.constant dense<0.000000e+00> : vector<16x8xf32>
    %34 = vector.multi_reduction <add>, %33, %cst_14 [2] : vector<16x8x4xf32> to vector<16x8xf32>
    %35 = vector.shape_cast %34 : vector<16x8xf32> to vector<16x8x1xf32>
    %cst_15 = arith.constant 4.000000e+00 : f32
    %36 = vector.broadcast %cst_15 : f32 to vector<16x8x1xf32>
    %37 = arith.divf %35, %36 : vector<16x8x1xf32>
    %cst_16 = arith.constant 9.99999974E-6 : f32
    %38 = vector.broadcast %cst_16 : f32 to vector<16x8x1xf32>
    %39 = arith.addf %37, %38 : vector<16x8x1xf32>
    %40 = math.rsqrt %39 : vector<16x8x1xf32>
    %41 = vector.broadcast %40 : vector<16x8x1xf32> to vector<16x8x4xf32>
    %42 = arith.mulf %32, %41 : vector<16x8x4xf32>
    %43 = vector.shape_cast %42 : vector<16x8x4xf32> to vector<128x4xf32>
    %44 = arith.truncf %43 : vector<128x4xf32> to vector<128x4xbf16>
    %c1 = arith.constant 1 : index
    %c0_17 = arith.constant 0 : index
    %c0_18 = arith.constant 0 : index
    %45 = vector.load %arg2[%c1, %c0_17, %c0_18] : memref<4x4x128xbf16, #tpu.memory_space<vmem>>, vector<1x4x128xbf16>
    %46 = vector.shape_cast %45 : vector<1x4x128xbf16> to vector<4x128xbf16>
    %cst_19 = arith.constant dense<0.000000e+00> : vector<128x128xf32>
    %47 = tpu.matmul %44, %46, %cst_19 {dimension_numbers = #tpu.dot_dimension_numbers<[1], [0], [0], [1], [0, 0, 1, 1], [], []>} : vector<128x4xbf16>, vector<4x128xbf16>, vector<128x128xf32> -> vector<128x128xf32>
    %48 = arith.addf %25, %47 : vector<128x128xf32>
    %c0_20 = arith.constant 0 : index
    %c1_21 = arith.constant 1 : index
    %c0_22 = arith.constant 0 : index
    %c0_23 = arith.constant 0 : index
    %49 = vector.load %arg1[%c0_20, %c1_21, %c0_22, %c0_23] : memref<16x2x8x8xf32, #tpu.memory_space<vmem>>, vector<16x1x8x8xf32>
    %50 = vector.shape_cast %49 : vector<16x1x8x8xf32> to vector<16x8x8xf32>
    %51 = vector.extract_strided_slice %50 {offsets = [0, 0, 0], sizes = [16, 8, 4], strides = [1, 1, 1]} : vector<16x8x8xf32> to vector<16x8x4xf32>
    %cst_24 = arith.constant dense<0.000000e+00> : vector<16x8xf32>
    %52 = vector.multi_reduction <add>, %51, %cst_24 [2] : vector<16x8x4xf32> to vector<16x8xf32>
    %53 = vector.shape_cast %52 : vector<16x8xf32> to vector<16x8x1xf32>
    %cst_25 = arith.constant 4.000000e+00 : f32
    %54 = vector.broadcast %cst_25 : f32 to vector<16x8x1xf32>
    %55 = arith.divf %53, %54 : vector<16x8x1xf32>
    %56 = vector.broadcast %55 : vector<16x8x1xf32> to vector<16x8x4xf32>
    %57 = arith.subf %51, %56 : vector<16x8x4xf32>
    %58 = arith.mulf %57, %57 : vector<16x8x4xf32>
    %cst_26 = arith.constant dense<0.000000e+00> : vector<16x8xf32>
    %59 = vector.multi_reduction <add>, %58, %cst_26 [2] : vector<16x8x4xf32> to vector<16x8xf32>
    %60 = vector.shape_cast %59 : vector<16x8xf32> to vector<16x8x1xf32>
    %cst_27 = arith.constant 4.000000e+00 : f32
    %61 = vector.broadcast %cst_27 : f32 to vector<16x8x1xf32>
    %62 = arith.divf %60, %61 : vector<16x8x1xf32>
    %cst_28 = arith.constant 9.99999974E-6 : f32
    %63 = vector.broadcast %cst_28 : f32 to vector<16x8x1xf32>
    %64 = arith.addf %62, %63 : vector<16x8x1xf32>
    %65 = math.rsqrt %64 : vector<16x8x1xf32>
    %66 = vector.broadcast %65 : vector<16x8x1xf32> to vector<16x8x4xf32>
    %67 = arith.mulf %57, %66 : vector<16x8x4xf32>
    %68 = vector.shape_cast %67 : vector<16x8x4xf32> to vector<128x4xf32>
    %69 = arith.truncf %68 : vector<128x4xf32> to vector<128x4xbf16>
    %c2 = arith.constant 2 : index
    %c0_29 = arith.constant 0 : index
    %c0_30 = arith.constant 0 : index
    %70 = vector.load %arg2[%c2, %c0_29, %c0_30] : memref<4x4x128xbf16, #tpu.memory_space<vmem>>, vector<1x4x128xbf16>
    %71 = vector.shape_cast %70 : vector<1x4x128xbf16> to vector<4x128xbf16>
    %cst_31 = arith.constant dense<0.000000e+00> : vector<128x128xf32>
    %72 = tpu.matmul %69, %71, %cst_31 {dimension_numbers = #tpu.dot_dimension_numbers<[1], [0], [0], [1], [0, 0, 1, 1], [], []>} : vector<128x4xbf16>, vector<4x128xbf16>, vector<128x128xf32> -> vector<128x128xf32>
    %73 = arith.addf %48, %72 : vector<128x128xf32>
    %74 = vector.extract_strided_slice %50 {offsets = [0, 0, 4], sizes = [16, 8, 4], strides = [1, 1, 1]} : vector<16x8x8xf32> to vector<16x8x4xf32>
    %cst_32 = arith.constant dense<0.000000e+00> : vector<16x8xf32>
    %75 = vector.multi_reduction <add>, %74, %cst_32 [2] : vector<16x8x4xf32> to vector<16x8xf32>
    %76 = vector.shape_cast %75 : vector<16x8xf32> to vector<16x8x1xf32>
    %cst_33 = arith.constant 4.000000e+00 : f32
    %77 = vector.broadcast %cst_33 : f32 to vector<16x8x1xf32>
    %78 = arith.divf %76, %77 : vector<16x8x1xf32>
    %79 = vector.broadcast %78 : vector<16x8x1xf32> to vector<16x8x4xf32>
    %80 = arith.subf %74, %79 : vector<16x8x4xf32>
    %81 = arith.mulf %80, %80 : vector<16x8x4xf32>
    %cst_34 = arith.constant dense<0.000000e+00> : vector<16x8xf32>
    %82 = vector.multi_reduction <add>, %81, %cst_34 [2] : vector<16x8x4xf32> to vector<16x8xf32>
    %83 = vector.shape_cast %82 : vector<16x8xf32> to vector<16x8x1xf32>
    %cst_35 = arith.constant 4.000000e+00 : f32
    %84 = vector.broadcast %cst_35 : f32 to vector<16x8x1xf32>
    %85 = arith.divf %83, %84 : vector<16x8x1xf32>
    %cst_36 = arith.constant 9.99999974E-6 : f32
    %86 = vector.broadcast %cst_36 : f32 to vector<16x8x1xf32>
    %87 = arith.addf %85, %86 : vector<16x8x1xf32>
    %88 = math.rsqrt %87 : vector<16x8x1xf32>
    %89 = vector.broadcast %88 : vector<16x8x1xf32> to vector<16x8x4xf32>
    %90 = arith.mulf %80, %89 : vector<16x8x4xf32>
    %91 = vector.shape_cast %90 : vector<16x8x4xf32> to vector<128x4xf32>
    %92 = arith.truncf %91 : vector<128x4xf32> to vector<128x4xbf16>
    %c3 = arith.constant 3 : index
    %c0_37 = arith.constant 0 : index
    %c0_38 = arith.constant 0 : index
    %93 = vector.load %arg2[%c3, %c0_37, %c0_38] : memref<4x4x128xbf16, #tpu.memory_space<vmem>>, vector<1x4x128xbf16>
    %94 = vector.shape_cast %93 : vector<1x4x128xbf16> to vector<4x128xbf16>
    %cst_39 = arith.constant dense<0.000000e+00> : vector<128x128xf32>
    %95 = tpu.matmul %92, %94, %cst_39 {dimension_numbers = #tpu.dot_dimension_numbers<[1], [0], [0], [1], [0, 0, 1, 1], [], []>} : vector<128x4xbf16>, vector<4x128xbf16>, vector<128x128xf32> -> vector<128x128xf32>
    %96 = arith.addf %73, %95 : vector<128x128xf32>
    %c0_40 = arith.constant 0 : index
    %c0_41 = arith.constant 0 : index
    %97 = vector.load %arg3[%c0_40, %c0_41] : memref<1x128xf32, #tpu.memory_space<vmem>>, vector<1x128xf32>
    %98 = vector.broadcast %97 : vector<1x128xf32> to vector<128x128xf32>
    %99 = arith.addf %96, %98 : vector<128x128xf32>
    %c0_42 = arith.constant 0 : index
    %c0_43 = arith.constant 0 : index
    %100 = vector.load %arg4[%c0_42, %c0_43] : memref<128x128xf32, #tpu.memory_space<vmem>>, vector<128x128xf32>
    tpu.vector_store %arg4[%c0_42, %c0_43], %99 {strides = array<i32>} : memref<128x128xf32, #tpu.memory_space<vmem>>, vector<128x128xf32>,
    return
  }
  func.func @transform_0(%arg0: i32) -> (i32, i32, i32, i32) {
    %c0_i32 = arith.constant 0 : i32
    %c0_i32_0 = arith.constant 0 : i32
    %c0_i32_1 = arith.constant 0 : i32
    %c0_i32_2 = arith.constant 0 : i32
    return %arg0, %c0_i32, %c0_i32_0, %c0_i32_1 : i32, i32, i32, i32
  }
  func.func @transform_1(%arg0: i32) -> (i32, i32, i32) {
    %c0_i32 = arith.constant 0 : i32
    %c0_i32_0 = arith.constant 0 : i32
    %c0_i32_1 = arith.constant 0 : i32
    %c0_i32_2 = arith.constant 0 : i32
    return %c0_i32, %c0_i32_0, %c0_i32_1 : i32, i32, i32
  }
  func.func @transform_2(%arg0: i32) -> (i32, i32) {
    %c0_i32 = arith.constant 0 : i32
    %c0_i32_0 = arith.constant 0 : i32
    %c0_i32_1 = arith.constant 0 : i32
    return %c0_i32, %c0_i32_0 : i32, i32
  }
  func.func @transform_3(%arg0: i32) -> (i32, i32) {
    %c0_i32 = arith.constant 0 : i32
    %c0_i32_0 = arith.constant 0 : i32
    return %arg0, %c0_i32 : i32, i32
  }
}

</mosaic_0001>

<bundles_post_ra>
// kernel: tpu_custom_call.1
= control target key start
LH: loop header
LB: loop body
LE: loop exit
PB: predicated region body
PF: predicated region fallthrough
CT: control target
= control target key end

     0   :  { %s2196_s16 = smov 124   ;;  %s3373_s0 = inlined_call_operand.vmem [shape: f32[16,2,8,8], index: 0, kind: input, shape index: {}]   ;;  %s3374_s1 = inlined_call_operand.vmem [shape: bf16[4,4,128], index: 1, kind: input, shape index: {}]   ;;  %s3375_s2 = inlined_call_operand.vmem [shape: f32[1,128], index: 2, kind: input, shape index: {}]   ;;  %s3376_s3 = inlined_call_operand.hbm [shape: f32[128,128], index: 3, kind: output, shape index: {}]  }
   0x1   :  { %v2223_v0 = vld [vmem:[%s3373_s0] sm:$0xff]  ;;  %v2237_v2 = vld [vmem:[%s3373_s0 + $0x30] sm:$0xff] }
   0x2   :  { %v2228_v1 = vld [vmem:[%s3373_s0 + $0x20] sm:$0xff]  ;;  %267 = vrot.lane.b32.xlu0 %v2223_v0, %s2196_s16  ;;  %v2242_v3 = vld [vmem:[%s3373_s0 + $0x10] sm:$0xff] }
   0x3   :  { %271 = vrot.lane.b32.xlu1 %v2228_v1, %s2196_s16  ;;  %v2251_v4 = vld [vmem:[%s3373_s0 + $0x50] sm:$0xff]  ;;  %v2256_v5 = vld [vmem:[%s3373_s0 + $0x40] sm:$0xff] }
   0x4   :  { %v2265_v6 = vld [vmem:[%s3373_s0 + $0x70] sm:$0xff]  ;;  %v2270_v7 = vld [vmem:[%s3373_s0 + $0x60] sm:$0xff] }
   0x6   :  { %269 = vrot.lane.b32.xlu0 %v2242_v3, %s2196_s16 }
   0x7   :  { %273 = vrot.lane.b32.xlu1 %v2237_v2, %s2196_s16 }
   0xa   :  { %275 = vrot.lane.b32.xlu0 %v2256_v5, %s2196_s16 }
   0xb   :  { %277 = vrot.lane.b32.xlu1 %v2251_v4, %s2196_s16 }
   0xc   :  { %8 = vsyncpa [#allocation3], 0  ;;  %v2279_v8 = vld [vmem:[%s3373_s0 + $0x90] sm:$0xff]  ;;  %v2284_v9 = vld [vmem:[%s3373_s0 + $0x80] sm:$0xff]  ;;  %vm32_vm0 = vcmask 31744   ;;  %vm645_vm1 = vcmask 1041408  }
   0xd   :  { %v2293_v10 = vld [vmem:[%s3373_s0 + $0xb0] sm:$0xff]  ;;  %v2298_v11 = vld [vmem:[%s3373_s0 + $0xa0] sm:$0xff]  ;;  %v2335_v16 = vld [vmem:[%s3373_s0 + $0x18] sm:$0xff] }
   0xe   :  { %279 = vrot.lane.b32.xlu0 %v2270_v7, %s2196_s16  ;;  %v2307_v12 = vld [vmem:[%s3373_s0 + $0xd0] sm:$0xff]  ;;  %v2312_v13 = vld [vmem:[%s3373_s0 + $0xc0] sm:$0xff]  ;;  %v2340_v17 = vld [vmem:[%s3373_s0 + $0x8] sm:$0xff] }
   0xf   :  { %281 = vrot.lane.b32.xlu1 %v2265_v6, %s2196_s16  ;;  %v2321_v14 = vld [vmem:[%s3373_s0 + $0xf0] sm:$0xff]  ;;  %v2326_v15 = vld [vmem:[%s3373_s0 + $0xe0] sm:$0xff]  ;;  %v2349_v18 = vld [vmem:[%s3373_s0 + $0x38] sm:$0xff] }
  0x10   :  { %v2354_v19 = vld [vmem:[%s3373_s0 + $0x28] sm:$0xff]  ;;  %v2363_v20 = vld [vmem:[%s3373_s0 + $0x58] sm:$0xff] }
  0x11   :  { %v2368_v21 = vld [vmem:[%s3373_s0 + $0x48] sm:$0xff]  ;;  %v2382_v23 = vld [vmem:[%s3373_s0 + $0x78] sm:$0xff] }
  0x12   :  { %283 = vrot.lane.b32.xlu0 %v2284_v9, %s2196_s16  ;;  %v2377_v22 = vld [vmem:[%s3373_s0 + $0x68] sm:$0xff]  ;;  %v2396_v25 = vld [vmem:[%s3373_s0 + $0x98] sm:$0xff] }
  0x13   :  { %285 = vrot.lane.b32.xlu1 %v2279_v8, %s2196_s16  ;;  %v2391_v24 = vld [vmem:[%s3373_s0 + $0x88] sm:$0xff]  ;;  %v2410_v27 = vld [vmem:[%s3373_s0 + $0xb8] sm:$0xff] }
  0x14   :  { %v2405_v26 = vld [vmem:[%s3373_s0 + $0xa8] sm:$0xff]  ;;  %v2424_v29 = vld [vmem:[%s3373_s0 + $0xd8] sm:$0xff] }
  0x15   :  { %v2419_v28 = vld [vmem:[%s3373_s0 + $0xc8] sm:$0xff]  ;;  %v2438_v31 = vld [vmem:[%s3373_s0 + $0xf8] sm:$0xff] }
  0x16   :  { %287 = vrot.lane.b32.xlu0 %v2298_v11, %s2196_s16  ;;  %v2433_v30 = vld [vmem:[%s3373_s0 + $0xe8] sm:$0xff] }
  0x17   :  { %289 = vrot.lane.b32.xlu1 %v2293_v10, %s2196_s16 }
  0x1a   :  { %291 = vrot.lane.b32.xlu0 %v2312_v13, %s2196_s16 }
  0x1b   :  { %293 = vrot.lane.b32.xlu1 %v2307_v12, %s2196_s16 }
  0x1e   :  { %295 = vrot.lane.b32.xlu0 %v2326_v15, %s2196_s16 }
  0x1f   :  { %297 = vrot.lane.b32.xlu1 %v2321_v14, %s2196_s16 }
  0x22   :  { %1261 = vrot.lane.b32.xlu0 %v2340_v17, %s2196_s16 }
  0x23   :  { %1263 = vrot.lane.b32.xlu1 %v2335_v16, %s2196_s16 }
  0x26   :  { %1265 = vrot.lane.b32.xlu0 %v2354_v19, %s2196_s16 }
  0x27   :  { %1267 = vrot.lane.b32.xlu1 %v2349_v18, %s2196_s16 }
  0x2a   :  { %1269 = vrot.lane.b32.xlu0 %v2368_v21, %s2196_s16 }
  0x2b   :  { %1271 = vrot.lane.b32.xlu1 %v2363_v20, %s2196_s16 }
  0x2e   :  { %1273 = vrot.lane.b32.xlu0 %v2377_v22, %s2196_s16 }
  0x2f   :  { %1275 = vrot.lane.b32.xlu1 %v2382_v23, %s2196_s16 }
  0x32   :  { %1277 = vrot.lane.b32.xlu0 %v2391_v24, %s2196_s16 }
  0x33   :  { %1279 = vrot.lane.b32.xlu1 %v2396_v25, %s2196_s16 }
  0x36   :  { %1281 = vrot.lane.b32.xlu0 %v2405_v26, %s2196_s16 }
  0x37   :  { %1283 = vrot.lane.b32.xlu1 %v2410_v27, %s2196_s16 }
  0x3a   :  { %1285 = vrot.lane.b32.xlu0 %v2419_v28, %s2196_s16 }
  0x3b   :  { %1287 = vrot.lane.b32.xlu1 %v2424_v29, %s2196_s16 }
  0x3e   :  { %1289 = vrot.lane.b32.xlu0 %v2433_v30, %s2196_s16 }
  0x3f   :  { %1291 = vrot.lane.b32.xlu1 %v2438_v31, %s2196_s16 }
  0x74   :  { %v268_v32 = vpop.permute.xlu0 %267 }
  0x75   :  { %v272_v33 = vpop.permute.xlu1 %271  ;;  %v315_v34 = vsel %vm32_vm0, %v268_v32, 0.0 }
  0x76   :  { %316 = vadd.xlane.f32.xlu0 %v315_v34  ;;  %v321_v35 = vsel %vm32_vm0, %v272_v33, 0.0 }
  0x78   :  { %v270_v37 = vpop.permute.xlu0 %269 }
  0x79   :  { %v274_v36 = vpop.permute.xlu1 %273  ;;  %v318_v38 = vsel %vm32_vm0, %v270_v37, 0.0 }
  0x7a   :  { %322 = vadd.xlane.f32.xlu0 %v321_v35  ;;  %319 = vadd.xlane.f32.xlu1 %v318_v38  ;;  %v324_v39 = vsel %vm32_vm0, %v274_v36, 0.0 }
  0x7c   :  { %v276_v41 = vpop.permute.xlu0 %275 }
  0x7d   :  { %v278_v40 = vpop.permute.xlu1 %277  ;;  %v327_v42 = vsel %vm32_vm0, %v276_v41, 0.0 }
  0x7e   :  { %325 = vadd.xlane.f32.xlu0 %v324_v39  ;;  %328 = vadd.xlane.f32.xlu1 %v327_v42  ;;  %v330_v43 = vsel %vm32_vm0, %v278_v40, 0.0 }
  0x80   :  { %v280_v45 = vpop.permute.xlu0 %279 }
  0x81   :  { %v282_v44 = vpop.permute.xlu1 %281  ;;  %v333_v46 = vsel %vm32_vm0, %v280_v45, 0.0 }
  0x82   :  { %331 = vadd.xlane.f32.xlu0 %v330_v43  ;;  %334 = vadd.xlane.f32.xlu1 %v333_v46  ;;  %v336_v47 = vsel %vm32_vm0, %v282_v44, 0.0 }
  0x84   :  { %v284_v49 = vpop.permute.xlu0 %283 }
  0x85   :  { %v286_v48 = vpop.permute.xlu1 %285  ;;  %v339_v50 = vsel %vm32_vm0, %v284_v49, 0.0 }
  0x86   :  { %337 = vadd.xlane.f32.xlu0 %v336_v47  ;;  %340 = vadd.xlane.f32.xlu1 %v339_v50  ;;  %v342_v51 = vsel %vm32_vm0, %v286_v48, 0.0 }
  0x88   :  { %v288_v53 = vpop.permute.xlu0 %287 }
  0x89   :  { %v290_v52 = vpop.permute.xlu1 %289  ;;  %v345_v54 = vsel %vm32_vm0, %v288_v53, 0.0 }
  0x8a   :  { %343 = vadd.xlane.f32.xlu0 %v342_v51  ;;  %346 = vadd.xlane.f32.xlu1 %v345_v54  ;;  %v348_v55 = vsel %vm32_vm0, %v290_v52, 0.0 }
  0x8c   :  { %v292_v57 = vpop.permute.xlu0 %291 }
  0x8d   :  { %v294_v56 = vpop.permute.xlu1 %293  ;;  %v351_v58 = vsel %vm32_vm0, %v292_v57, 0.0 }
  0x8e   :  { %349 = vadd.xlane.f32.xlu0 %v348_v55  ;;  %352 = vadd.xlane.f32.xlu1 %v351_v58  ;;  %v354_v59 = vsel %vm32_vm0, %v294_v56, 0.0 }
  0x90   :  { %v296_v61 = vpop.permute.xlu0 %295 }
  0x91   :  { %v298_v60 = vpop.permute.xlu1 %297  ;;  %v357_v62 = vsel %vm32_vm0, %v296_v61, 0.0 }
  0x92   :  { %355 = vadd.xlane.f32.xlu0 %v354_v59  ;;  %358 = vadd.xlane.f32.xlu1 %v357_v62  ;;  %v360_v63 = vsel %vm32_vm0, %v298_v60, 0.0 }
  0x94   :  { %v1262_v33 = vpop.permute.xlu0 %1261 }
  0x95   :  { %v1264_v32 = vpop.permute.xlu1 %1263  ;;  %v1309_v34 = vsel %vm32_vm0, %v1262_v33, 0.0  ;;  %v887_v33 = vsel %vm32_vm0, %v2340_v17, 0.0 }
  0x96   :  { %361 = vadd.xlane.f32.xlu0 %v360_v63  ;;  %1310 = vadd.xlane.f32.xlu1 %v1309_v34  ;;  %v1312_v35 = vsel %vm32_vm0, %v1264_v32, 0.0  ;;  %v890_v32 = vsel %vm32_vm0, %v2335_v16, 0.0  ;;  %v893_v34 = vsel %vm32_vm0, %v2354_v19, 0.0 }
  0x98   :  { %v1266_v37 = vpop.permute.xlu0 %1265 }
  0x99   :  { %v1268_v36 = vpop.permute.xlu1 %1267  ;;  %v1315_v38 = vsel %vm32_vm0, %v1266_v37, 0.0 }
  0x9a   :  { %1313 = vadd.xlane.f32.xlu0 %v1312_v35  ;;  %1316 = vadd.xlane.f32.xlu1 %v1315_v38  ;;  %v1318_v39 = vsel %vm32_vm0, %v1268_v36, 0.0  ;;  %v896_v35 = vsel %vm32_vm0, %v2349_v18, 0.0 }
  0x9c   :  { %v1270_v41 = vpop.permute.xlu0 %1269 }
  0x9d   :  { %v1272_v40 = vpop.permute.xlu1 %1271  ;;  %v1321_v42 = vsel %vm32_vm0, %v1270_v41, 0.0 }
  0x9e   :  { %1319 = vadd.xlane.f32.xlu0 %v1318_v39  ;;  %1322 = vadd.xlane.f32.xlu1 %v1321_v42  ;;  %v1324_v43 = vsel %vm32_vm0, %v1272_v40, 0.0 }
  0xa0   :  { %v1274_v44 = vpop.permute.xlu0 %1273 }
  0xa1   :  { %v1276_v45 = vpop.permute.xlu1 %1275  ;;  %v1327_v46 = vsel %vm32_vm0, %v1274_v44, 0.0 }
  0xa2   :  { %1325 = vadd.xlane.f32.xlu0 %v1324_v43  ;;  %1328 = vadd.xlane.f32.xlu1 %v1327_v46  ;;  %v1330_v47 = vsel %vm32_vm0, %v1276_v45, 0.0 }
  0xa4   :  { %v1278_v48 = vpop.permute.xlu0 %1277 }
  0xa5   :  { %v1280_v49 = vpop.permute.xlu1 %1279  ;;  %v1333_v50 = vsel %vm32_vm0, %v1278_v48, 0.0 }
  0xa6   :  { %1331 = vadd.xlane.f32.xlu0 %v1330_v47  ;;  %1334 = vadd.xlane.f32.xlu1 %v1333_v50  ;;  %v1336_v51 = vsel %vm32_vm0, %v1280_v49, 0.0 }
  0xa8   :  { %v1282_v52 = vpop.permute.xlu0 %1281 }
  0xa9   :  { %v1284_v53 = vpop.permute.xlu1 %1283  ;;  %v1339_v54 = vsel %vm32_vm0, %v1282_v52, 0.0 }
  0xaa   :  { %1337 = vadd.xlane.f32.xlu0 %v1336_v51  ;;  %1340 = vadd.xlane.f32.xlu1 %v1339_v54  ;;  %v1342_v55 = vsel %vm32_vm0, %v1284_v53, 0.0 }
  0xac   :  { %v1286_v56 = vpop.permute.xlu0 %1285 }
  0xad   :  { %v1288_v57 = vpop.permute.xlu1 %1287  ;;  %v1345_v58 = vsel %vm32_vm0, %v1286_v56, 0.0 }
  0xae   :  { %1343 = vadd.xlane.f32.xlu0 %v1342_v55  ;;  %1346 = vadd.xlane.f32.xlu1 %v1345_v58  ;;  %v1348_v59 = vsel %vm32_vm0, %v1288_v57, 0.0 }
  0xb0   :  { %v1290_v60 = vpop.permute.xlu0 %1289 }
  0xb1   :  { %v1292_v61 = vpop.permute.xlu1 %1291  ;;  %v1351_v62 = vsel %vm32_vm0, %v1290_v60, 0.0 }
  0xb2   :  { %1349 = vadd.xlane.f32.xlu0 %v1348_v59  ;;  %1352 = vadd.xlane.f32.xlu1 %v1351_v62  ;;  %v1354_v63 = vsel %vm32_vm0, %v1292_v61, 0.0 }
  0xb6   :  { %1355 = vadd.xlane.f32.xlu0 %v1354_v63  ;;  %891 = vadd.xlane.f32.xlu1 %v890_v32 }
  0xba   :  { %888 = vadd.xlane.f32.xlu0 %v887_v33 }
  0xbe   :  { %894 = vadd.xlane.f32.xlu0 %v893_v34 }
  0xc2   :  { %897 = vadd.xlane.f32.xlu0 %v896_v35 }
 0x103   :  { %v317_v36 = vpop.xlane.xlu0 %316 }
 0x104   :  { %v363_v37 = vmul.f32 0.25, %v317_v36 }
 0x106   :  { %v2485_v38 = vsub.f32 %v2223_v0, %v363_v37 }
 0x107   :  { %v323_v39 = vpop.xlane.xlu0 %322  ;;  %v320_v40 = vpop.xlane.xlu1 %319 }
 0x108   :  { %v365_v41 = vmul.f32 0.25, %v323_v39  ;;  %v395_v42 = vmul.f32 %v2485_v38, %v2485_v38  ;;  %v364_v43 = vmul.f32 0.25, %v320_v40 }
 0x10a   :  { %v2490_v44 = vsub.f32 %v2228_v1, %v365_v41  ;;  %427 = vrot.lane.b32.xlu1 %v395_v42, %s2196_s16  ;;  %v2494_v45 = vsub.f32 %v2242_v3, %v364_v43 }
 0x10b   :  { %v326_v46 = vpop.xlane.xlu0 %325  ;;  %v329_v47 = vpop.xlane.xlu1 %328 }
 0x10c   :  { %v366_v48 = vmul.f32 0.25, %v326_v46  ;;  %v397_v49 = vmul.f32 %v2490_v44, %v2490_v44  ;;  %v367_v50 = vmul.f32 0.25, %v329_v47  ;;  %v396_v51 = vmul.f32 %v2494_v45, %v2494_v45 }
 0x10e   :  { %v2501_v52 = vsub.f32 %v2237_v2, %v366_v48  ;;  %431 = vrot.lane.b32.xlu1 %v397_v49, %s2196_s16  ;;  %v2505_v53 = vsub.f32 %v2256_v5, %v367_v50  ;;  %429 = vrot.lane.b32.xlu0 %v396_v51, %s2196_s16 }
 0x10f   :  { %v332_v54 = vpop.xlane.xlu0 %331  ;;  %v335_v55 = vpop.xlane.xlu1 %334 }
 0x110   :  { %v368_v56 = vmul.f32 0.25, %v332_v54  ;;  %v398_v57 = vmul.f32 %v2501_v52, %v2501_v52  ;;  %v369_v58 = vmul.f32 0.25, %v335_v55  ;;  %v399_v59 = vmul.f32 %v2505_v53, %v2505_v53 }
 0x112   :  { %v2513_v60 = vsub.f32 %v2251_v4, %v368_v56  ;;  %433 = vrot.lane.b32.xlu1 %v398_v57, %s2196_s16  ;;  %v2517_v61 = vsub.f32 %v2270_v7, %v369_v58  ;;  %435 = vrot.lane.b32.xlu0 %v399_v59, %s2196_s16 }
 0x113   :  { %v338_v62 = vpop.xlane.xlu0 %337  ;;  %v341_v63 = vpop.xlane.xlu1 %340 }
 0x114   :  { %v370_v32 = vmul.f32 0.25, %v338_v62  ;;  %v400_v33 = vmul.f32 %v2513_v60, %v2513_v60  ;;  %v371_v34 = vmul.f32 0.25, %v341_v63  ;;  %v401_v35 = vmul.f32 %v2517_v61, %v2517_v61 }
 0x116   :  { %v2525_v36 = vsub.f32 %v2265_v6, %v370_v32  ;;  %437 = vrot.lane.b32.xlu1 %v400_v33, %s2196_s16  ;;  %v2529_v37 = vsub.f32 %v2284_v9, %v371_v34  ;;  %439 = vrot.lane.b32.xlu0 %v401_v35, %s2196_s16 }
 0x117   :  { %v344_v39 = vpop.xlane.xlu0 %343  ;;  %v347_v40 = vpop.xlane.xlu1 %346 }
 0x118   :  { %v372_v41 = vmul.f32 0.25, %v344_v39  ;;  %v402_v42 = vmul.f32 %v2525_v36, %v2525_v36  ;;  %v373_v43 = vmul.f32 0.25, %v347_v40  ;;  %v403_v46 = vmul.f32 %v2529_v37, %v2529_v37 }
 0x11a   :  { %v2537_v47 = vsub.f32 %v2279_v8, %v372_v41  ;;  %441 = vrot.lane.b32.xlu1 %v402_v42, %s2196_s16  ;;  %v2541_v48 = vsub.f32 %v2298_v11, %v373_v43  ;;  %443 = vrot.lane.b32.xlu0 %v403_v46, %s2196_s16 }
 0x11b   :  { %v350_v49 = vpop.xlane.xlu0 %349  ;;  %v353_v50 = vpop.xlane.xlu1 %352 }
 0x11c   :  { %v374_v51 = vmul.f32 0.25, %v350_v49  ;;  %v404_v54 = vmul.f32 %v2537_v47, %v2537_v47  ;;  %v375_v55 = vmul.f32 0.25, %v353_v50  ;;  %v405_v56 = vmul.f32 %v2541_v48, %v2541_v48 }
 0x11e   :  { %v2549_v57 = vsub.f32 %v2293_v10, %v374_v51  ;;  %445 = vrot.lane.b32.xlu1 %v404_v54, %s2196_s16  ;;  %v2553_v58 = vsub.f32 %v2312_v13, %v375_v55  ;;  %447 = vrot.lane.b32.xlu0 %v405_v56, %s2196_s16 }
 0x11f   :  { %v356_v59 = vpop.xlane.xlu0 %355  ;;  %v359_v62 = vpop.xlane.xlu1 %358 }
 0x120   :  { %v376_v63 = vmul.f32 0.25, %v356_v59  ;;  %v406_v32 = vmul.f32 %v2549_v57, %v2549_v57  ;;  %v377_v33 = vmul.f32 0.25, %v359_v62  ;;  %v407_v34 = vmul.f32 %v2553_v58, %v2553_v58 }
 0x122   :  { %v2561_v35 = vsub.f32 %v2307_v12, %v376_v63  ;;  %449 = vrot.lane.b32.xlu1 %v406_v32, %s2196_s16  ;;  %v2565_v39 = vsub.f32 %v2326_v15, %v377_v33  ;;  %451 = vrot.lane.b32.xlu0 %v407_v34, %s2196_s16 }
 0x123   :  { %v362_v40 = vpop.xlane.xlu0 %361  ;;  %v1311_v41 = vpop.xlane.xlu1 %1310 }
 0x124   :  { %v378_v42 = vmul.f32 0.25, %v362_v40  ;;  %v408_v43 = vmul.f32 %v2561_v35, %v2561_v35  ;;  %v1357_v46 = vmul.f32 0.25, %v1311_v41  ;;  %v409_v49 = vmul.f32 %v2565_v39, %v2565_v39 }
 0x126   :  { %v2573_v50 = vsub.f32 %v2321_v14, %v378_v42  ;;  %453 = vrot.lane.b32.xlu1 %v408_v43, %s2196_s16  ;;  %v2577_v51 = vsub.f32 %v2340_v17, %v1357_v46  ;;  %455 = vrot.lane.b32.xlu0 %v409_v49, %s2196_s16 }
 0x127   :  { %v1314_v54 = vpop.xlane.xlu0 %1313  ;;  %v1317_v55 = vpop.xlane.xlu1 %1316 }
 0x128   :  { %3405 = vst [vmem:[#allocation5_spill] sm:$0xff] %v2573_v50  ;;  %3406 = vst [vmem:[#allocation6_spill] sm:$0xff] %v2577_v51  ;;  %v1358_v56 = vmul.f32 0.25, %v1314_v54  ;;  %v410_v59 = vmul.f32 %v2573_v50, %v2573_v50  ;;  %v1359_v62 = vmul.f32 0.25, %v1317_v55  ;;  %v1389_v63 = vmul.f32 %v2577_v51, %v2577_v51 }
 0x12a   :  { %v2585_v32 = vsub.f32 %v2335_v16, %v1358_v56  ;;  %457 = vrot.lane.b32.xlu1 %v410_v59, %s2196_s16  ;;  %v2589_v33 = vsub.f32 %v2354_v19, %v1359_v62  ;;  %1421 = vrot.lane.b32.xlu0 %v1389_v63, %s2196_s16 }
 0x12b   :  { %v1320_v34 = vpop.xlane.xlu0 %1319  ;;  %v1323_v40 = vpop.xlane.xlu1 %1322 }
 0x12c   :  { %3407 = vst [vmem:[#allocation7_spill] sm:$0xff] %v2585_v32  ;;  %3408 = vst [vmem:[#allocation8_spill] sm:$0xff] %v2589_v33  ;;  %v1360_v41 = vmul.f32 0.25, %v1320_v34  ;;  %v1390_v42 = vmul.f32 %v2585_v32, %v2585_v32  ;;  %v1361_v43 = vmul.f32 0.25, %v1323_v40  ;;  %v1391_v46 = vmul.f32 %v2589_v33, %v2589_v33 }
 0x12d   :  { %v926_v33 = vsel %vm32_vm0, %v2424_v29, 0.0 }
 0x12e   :  { %v2597_v49 = vsub.f32 %v2349_v18, %v1360_v41  ;;  %1423 = vrot.lane.b32.xlu1 %v1390_v42, %s2196_s16  ;;  %v2601_v54 = vsub.f32 %v2368_v21, %v1361_v43  ;;  %1425 = vrot.lane.b32.xlu0 %v1391_v46, %s2196_s16 }
 0x12f   :  { %v1326_v55 = vpop.xlane.xlu0 %1325  ;;  %v1329_v56 = vpop.xlane.xlu1 %1328 }
 0x130   :  { %3409 = vst [vmem:[#allocation9_spill] sm:$0xff] %v2597_v49  ;;  %3410 = vst [vmem:[#allocation10_spill] sm:$0xff] %v2601_v54  ;;  %v1362_v59 = vmul.f32 0.25, %v1326_v55  ;;  %v1392_v62 = vmul.f32 %v2597_v49, %v2597_v49  ;;  %v1363_v63 = vmul.f32 0.25, %v1329_v56  ;;  %v1393_v41 = vmul.f32 %v2601_v54, %v2601_v54 }
 0x132   :  { %v2607_v34 = vsub.f32 %v2363_v20, %v1362_v59  ;;  %1427 = vrot.lane.b32.xlu1 %v1392_v62, %s2196_s16  ;;  %v2611_v40 = vsub.f32 %v2377_v22, %v1363_v63  ;;  %v899_v62 = vsel %vm32_vm0, %v2368_v21, 0.0  ;;  %v905_v63 = vsel %vm32_vm0, %v2377_v22, 0.0 }
 0x133   :  { %v1332_v42 = vpop.xlane.xlu0 %1331 }
 0x134   :  { %3411 = vst [vmem:[#allocation11_spill] sm:$0xff] %v2607_v34  ;;  %3412 = vst [vmem:[#allocation12_spill] sm:$0xff] %v2611_v40  ;;  %v1394_v43 = vmul.f32 %v2607_v34, %v2607_v34  ;;  %v1364_v46 = vmul.f32 0.25, %v1332_v42  ;;  %v1395_v56 = vmul.f32 %v2611_v40, %v2611_v40  ;;  %v902_v42 = vsel %vm32_vm0, %v2363_v20, 0.0 }
 0x136   :  { %1429 = vrot.lane.b32.xlu1 %v1393_v41, %s2196_s16  ;;  %1431 = vrot.lane.b32.xlu0 %v1394_v43, %s2196_s16  ;;  %v2620_v55 = vsub.f32 %v2382_v23, %v1364_v46  ;;  %v908_v41 = vsel %vm32_vm0, %v2382_v23, 0.0  ;;  %v1335_v43 = vpop.xlane.xlu1 %1334 }
 0x137   :  { %v1338_v46 = vpop.xlane.xlu0 %1337 }
 0x138   :  { %3413 = vst [vmem:[#allocation13_spill] sm:$0xff] %v2620_v55  ;;  %v1396_v59 = vmul.f32 %v2620_v55, %v2620_v55 }
 0x13a   :  { %1433 = vrot.lane.b32.xlu1 %v1395_v56, %s2196_s16  ;;  %v1365_v56 = vmul.f32 0.25, %v1335_v43  ;;  %v1341_v55 = vpop.xlane.xlu1 %1340 }
 0x13b   :  { %v1344_v34 = vpop.xlane.xlu0 %1343 }
 0x13c   :  { %v2637_v40 = vsub.f32 %v2391_v24, %v1365_v56 }
 0x13e   :  { %1435 = vrot.lane.b32.xlu1 %v1396_v59, %s2196_s16  ;;  %v1366_v59 = vmul.f32 0.25, %v1338_v46  ;;  %3414 = vst [vmem:[#allocation14_spill] sm:$0xff] %v2637_v40  ;;  %v1397_v43 = vmul.f32 %v2637_v40, %v2637_v40 }
 0x155   :  { %900 = vadd.xlane.f32.xlu0 %v899_v62  ;;  %v2640_v62 = vsub.f32 %v2396_v25, %v1366_v59  ;;  %v917_v59 = vsel %vm32_vm0, %v2405_v26, 0.0 }
 0x157   :  { %3415 = vst [vmem:[#allocation15_spill] sm:$0xff] %v2640_v62 }
 0x159   :  { %906 = vadd.xlane.f32.xlu0 %v905_v63  ;;  %v1367_v63 = vmul.f32 0.25, %v1341_v55 }
 0x15b   :  { %v2645_v54 = vsub.f32 %v2405_v26, %v1367_v63  ;;  %v920_v63 = vsel %vm32_vm0, %v2410_v27, 0.0 }
 0x15d   :  { %909 = vadd.xlane.f32.xlu0 %v908_v41  ;;  %v1398_v41 = vmul.f32 %v2640_v62, %v2640_v62  ;;  %3416 = vst [vmem:[#allocation16_spill] sm:$0xff] %v2645_v54  ;;  %v1399_v55 = vmul.f32 %v2645_v54, %v2645_v54 }
 0x162   :  { %903 = vadd.xlane.f32.xlu1 %v902_v42  ;;  %v1368_v42 = vmul.f32 0.25, %v1344_v34  ;;  %v911_v34 = vsel %vm32_vm0, %v2391_v24, 0.0 }
 0x164   :  { %v2652_v46 = vsub.f32 %v2410_v27, %v1368_v42  ;;  %v1347_v42 = vpop.xlane.xlu1 %1346 }
 0x166   :  { %3417 = vst [vmem:[#allocation17_spill] sm:$0xff] %v2652_v46  ;;  %v1400_v56 = vmul.f32 %v2652_v46, %v2652_v46 }
 0x168   :  { %v1353_v46 = vpop.xlane.xlu1 %1352 }
 0x173   :  { %1437 = vrot.lane.b32.xlu1 %v1397_v43, %s2196_s16  ;;  %1439 = vrot.lane.b32.xlu0 %v1398_v41, %s2196_s16  ;;  %v914_v41 = vsel %vm32_vm0, %v2396_v25, 0.0  ;;  %v1350_v43 = vpop.xlane.xlu0 %1349 }
 0x177   :  { %1441 = vrot.lane.b32.xlu1 %v1399_v55, %s2196_s16  ;;  %v1369_v55 = vmul.f32 0.25, %v1347_v42  ;;  %v1356_v62 = vpop.xlane.xlu0 %1355 }
 0x178   :  { %v1372_v42 = vmul.f32 0.25, %v1356_v62 }
 0x179   :  { %v2669_v54 = vsub.f32 %v2419_v28, %v1369_v55 }
 0x17b   :  { %1443 = vrot.lane.b32.xlu1 %v1400_v56, %s2196_s16  ;;  %v1370_v56 = vmul.f32 0.25, %v1350_v43  ;;  %3418 = vst [vmem:[#allocation18_spill] sm:$0xff] %v2669_v54  ;;  %v2694_v62 = vpop.xlane.xlu0 %888 }
 0x192   :  { %912 = vadd.xlane.f32.xlu0 %v911_v34  ;;  %v2672_v34 = vsub.f32 %v2424_v29, %v1370_v56  ;;  %v2692_v56 = vpop.xlane.xlu1 %891 }
 0x194   :  { %3419 = vst [vmem:[#allocation19_spill] sm:$0xff] %v2672_v34  ;;  %v1402_v40 = vmul.f32 %v2672_v34, %v2672_v34 }
 0x196   :  { %918 = vadd.xlane.f32.xlu0 %v917_v59  ;;  %v1371_v59 = vmul.f32 0.25, %v1353_v46  ;;  %v2686_v46 = vsub.f32 %v2438_v31, %v1372_v42 }
 0x198   :  { %3421 = vst [vmem:[#allocation21_spill] sm:$0xff] %v2686_v46  ;;  %v1404_v55 = vmul.f32 %v2686_v46, %v2686_v46 }
 0x19a   :  { %921 = vadd.xlane.f32.xlu0 %v920_v63  ;;  %v1401_v63 = vmul.f32 %v2669_v54, %v2669_v54 }
 0x19f   :  { %915 = vadd.xlane.f32.xlu1 %v914_v41  ;;  %v2679_v41 = vsub.f32 %v2433_v30, %v1371_v59  ;;  %v428_v59 = vpop.permute.xlu1 %427 }
 0x1a0   :  { %v475_v42 = vsel %vm32_vm0, %v428_v59, 0.0  ;;  %v932_v59 = vsel %vm32_vm0, %v2438_v31, 0.0 }
 0x1a1   :  { %3420 = vst [vmem:[#allocation20_spill] sm:$0xff] %v2679_v41  ;;  %v1403_v43 = vmul.f32 %v2679_v41, %v2679_v41 }
 0x1b0   :  { %1445 = vrot.lane.b32.xlu1 %v1401_v63, %s2196_s16  ;;  %1447 = vrot.lane.b32.xlu0 %v1402_v40, %s2196_s16  ;;  %v2696_v63 = vpop.xlane.xlu0 %894  ;;  %v432_v40 = vpop.permute.xlu1 %431 }
 0x1b1   :  { %v481_v54 = vsel %vm32_vm0, %v432_v40, 0.0 }
 0x1b4   :  { %1449 = vrot.lane.b32.xlu1 %v1403_v43, %s2196_s16  ;;  %v2698_v34 = vpop.xlane.xlu0 %897  ;;  %v434_v41 = vpop.permute.xlu1 %433 }
 0x1b8   :  { %1451 = vrot.lane.b32.xlu1 %v1404_v55, %s2196_s16  ;;  %v430_v43 = vpop.permute.xlu0 %429  ;;  %v438_v46 = vpop.permute.xlu1 %437  ;;  %v484_v55 = vsel %vm32_vm0, %v434_v41, 0.0  ;;  %v929_v41 = vsel %vm32_vm0, %v2433_v30, 0.0 }
 0x1b9   :  { %v478_v32 = vsel %vm32_vm0, %v430_v43, 0.0 }
 0x1bc   :  { %v436_v49 = vpop.permute.xlu0 %435  ;;  %v442_v51 = vpop.permute.xlu1 %441 }
 0x1bd   :  { %v487_v43 = vsel %vm32_vm0, %v436_v49, 0.0  ;;  %v39_v49 = vsel %vm32_vm0, %v2228_v1, 0.0 }
 0x1c0   :  { %v446_v40 = vpop.permute.xlu1 %445 }
 0x1c4   :  { %v450_v50 = vpop.permute.xlu1 %449 }
 0x1cf   :  { %476 = vadd.xlane.f32.xlu0 %v475_v42  ;;  %v440_v42 = vpop.permute.xlu0 %439 }
 0x1d0   :  { %v493_v30 = vsel %vm32_vm0, %v440_v42, 0.0 }
 0x1d3   :  { %482 = vadd.xlane.f32.xlu0 %v481_v54  ;;  %v923_v54 = vsel %vm32_vm0, %v2419_v28, 0.0  ;;  %v36_v28 = vsel %vm32_vm0, %v2242_v3, 0.0  ;;  %v502_v3 = vsel %vm32_vm0, %v446_v40, 0.0  ;;  %v54_v40 = vsel %vm32_vm0, %v2265_v6, 0.0 }
 0x1d7   :  { %485 = vadd.xlane.f32.xlu0 %v484_v55  ;;  %v490_v55 = vsel %vm32_vm0, %v438_v46, 0.0  ;;  %v42_v46 = vsel %vm32_vm0, %v2237_v2, 0.0 }
 0x1db   :  { %927 = vadd.xlane.f32.xlu0 %v926_v33  ;;  %v444_v33 = vpop.permute.xlu0 %443 }
 0x1dc   :  { %479 = vadd.xlane.f32.xlu1 %v478_v32  ;;  %v496_v32 = vsel %vm32_vm0, %v442_v51, 0.0  ;;  %v454_v51 = vpop.permute.xlu1 %453  ;;  %v499_v2 = vsel %vm32_vm0, %v444_v33, 0.0 }
 0x1df   :  { %933 = vadd.xlane.f32.xlu0 %v932_v59  ;;  %v448_v59 = vpop.permute.xlu0 %447 }
 0x1e0   :  { %924 = vadd.xlane.f32.xlu1 %v923_v54  ;;  %v33_v54 = vsel %vm32_vm0, %v2223_v0, 0.0  ;;  %v48_v0 = vsel %vm32_vm0, %v2251_v4, 0.0  ;;  %v505_v1 = vsel %vm32_vm0, %v448_v59, 0.0  ;;  %v514_v4 = vsel %vm32_vm0, %v454_v51, 0.0 }
 0x1e1   :  { %v66_v51 = vsel %vm32_vm0, %v2293_v10, 0.0 }
 0x1e3   :  { %491 = vadd.xlane.f32.xlu0 %v490_v55  ;;  %v458_v55 = vpop.permute.xlu1 %457 }
 0x1e4   :  { %930 = vadd.xlane.f32.xlu1 %v929_v41  ;;  %v452_v41 = vpop.permute.xlu0 %451 }
 0x1e5   :  { %v511_v6 = vsel %vm32_vm0, %v452_v41, 0.0 }
 0x1e7   :  { %497 = vadd.xlane.f32.xlu0 %v496_v32  ;;  %v508_v32 = vsel %vm32_vm0, %v450_v50, 0.0 }
 0x1e8   :  { %488 = vadd.xlane.f32.xlu1 %v487_v43  ;;  %v456_v42 = vpop.permute.xlu0 %455  ;;  %v1424_v43 = vpop.permute.xlu1 %1423 }
 0x1eb   :  { %37 = vadd.xlane.f32.xlu0 %v36_v28 }
 0x1ec   :  { %494 = vadd.xlane.f32.xlu1 %v493_v30  ;;  %v1422_v28 = vpop.permute.xlu0 %1421  ;;  %v45_v30 = vsel %vm32_vm0, %v2256_v5, 0.0  ;;  %v1428_v50 = vpop.permute.xlu1 %1427  ;;  %v60_v5 = vsel %vm32_vm0, %v2279_v8, 0.0  ;;  %v63_v8 = vsel %vm32_vm0, %v2298_v11, 0.0 }
 0x1ed   :  { %v1478_v10 = vsel %vm32_vm0, %v1428_v50, 0.0 }
 0x1ef   :  { %43 = vadd.xlane.f32.xlu0 %v42_v46  ;;  %v51_v46 = vsel %vm32_vm0, %v2270_v7, 0.0  ;;  %v517_v7 = vsel %vm32_vm0, %v456_v42, 0.0 }
 0x1f0   :  { %34 = vadd.xlane.f32.xlu1 %v33_v54  ;;  %v1426_v33 = vpop.permute.xlu0 %1425  ;;  %v1430_v59 = vpop.permute.xlu1 %1429 }
 0x1f1   :  { %v1475_v11 = vsel %vm32_vm0, %v1426_v33, 0.0 }
 0x1f3   :  { %503 = vadd.xlane.f32.xlu0 %v502_v3 }
 0x1f4   :  { %40 = vadd.xlane.f32.xlu1 %v39_v49  ;;  %v1432_v54 = vpop.permute.xlu0 %1431  ;;  %v520_v49 = vsel %vm32_vm0, %v458_v55, 0.0  ;;  %v57_v55 = vsel %vm32_vm0, %v2284_v9, 0.0  ;;  %v1469_v9 = vsel %vm32_vm0, %v1422_v28, 0.0  ;;  %v75_v28 = vsel %vm32_vm0, %v2326_v15, 0.0 }
 0x1f7   :  { %509 = vadd.xlane.f32.xlu0 %v508_v32  ;;  %v1434_v32 = vpop.permute.xlu1 %1433 }
 0x1f8   :  { %500 = vadd.xlane.f32.xlu1 %v499_v2  ;;  %v2741_v3 = vpop.xlane.xlu0 %900  ;;  %v1487_v15 = vsel %vm32_vm0, %v1434_v32, 0.0 }
 0x1fb   :  { %49 = vadd.xlane.f32.xlu0 %v48_v0  ;;  %v1436_v41 = vpop.permute.xlu1 %1435  ;;  %v1472_v0 = vsel %vm32_vm0, %v1424_v43, 0.0  ;;  %v78_v43 = vsel %vm32_vm0, %v2321_v14, 0.0  ;;  %v1481_v14 = vsel %vm32_vm0, %v1430_v59, 0.0  ;;  %v936_v59 = vmul.f32 0.25, %v2692_v56 }
 0x1fc   :  { %506 = vadd.xlane.f32.xlu1 %v505_v1  ;;  %v2748_v2 = vpop.xlane.xlu0 %906 }
 0x1ff   :  { %55 = vadd.xlane.f32.xlu0 %v54_v40  ;;  %v904_v1 = vpop.xlane.xlu1 %903  ;;  %v72_v40 = vsel %vm32_vm0, %v2307_v12, 0.0 }
 0x200   :  { %46 = vadd.xlane.f32.xlu1 %v45_v30  ;;  %v2753_v42 = vpop.xlane.xlu0 %909 }
 0x203   :  { %515 = vadd.xlane.f32.xlu0 %v514_v4  ;;  %v69_v4 = vsel %vm32_vm0, %v2312_v13, 0.0 }
 0x204   :  { %52 = vadd.xlane.f32.xlu1 %v51_v46  ;;  %v1440_v30 = vpop.permute.xlu0 %1439  ;;  %v1438_v46 = vpop.permute.xlu1 %1437 }
 0x207   :  { %521 = vadd.xlane.f32.xlu0 %v520_v49  ;;  %v1484_v49 = vsel %vm32_vm0, %v1432_v54, 0.0 }
 0x208   :  { %512 = vadd.xlane.f32.xlu1 %v511_v6  ;;  %v1442_v12 = vpop.permute.xlu1 %1441  ;;  %v1490_v6 = vsel %vm32_vm0, %v1436_v41, 0.0 }
 0x20b   :  { %61 = vadd.xlane.f32.xlu0 %v60_v5 }
 0x20c   :  { %518 = vadd.xlane.f32.xlu1 %v517_v7  ;;  %v1444_v13 = vpop.permute.xlu1 %1443  ;;  %v1496_v7 = vsel %vm32_vm0, %v1440_v30, 0.0  ;;  %v938_v30 = vmul.f32 0.25, %v2698_v34 }
 0x20d   :  { %v1502_v54 = vsel %vm32_vm0, %v1444_v13, 0.0 }
 0x20f   :  { %67 = vadd.xlane.f32.xlu0 %v66_v51 }
 0x210   :  { %58 = vadd.xlane.f32.xlu1 %v57_v55 }
 0x213   :  { %1473 = vadd.xlane.f32.xlu0 %v1472_v0 }
 0x214   :  { %64 = vadd.xlane.f32.xlu1 %v63_v8  ;;  %v1493_v8 = vsel %vm32_vm0, %v1438_v46, 0.0  ;;  %v937_v46 = vmul.f32 0.25, %v2696_v63 }
 0x216   :  { %v2797_v34 = vsub.f32 %v2354_v19, %v937_v46 }
 0x217   :  { %1479 = vadd.xlane.f32.xlu0 %v1478_v10  ;;  %v935_v10 = vmul.f32 0.25, %v2694_v62  ;;  %v2791_v62 = vsub.f32 %v2349_v18, %v938_v30  ;;  %v942_v18 = vmul.f32 0.25, %v2753_v42 }
 0x218   :  { %1470 = vadd.xlane.f32.xlu1 %v1469_v9  ;;  %v1499_v9 = vsel %vm32_vm0, %v1442_v12, 0.0  ;;  %v969_v13 = vmul.f32 %v2797_v34, %v2797_v34 }
 0x21b   :  { %73 = vadd.xlane.f32.xlu0 %v72_v40  ;;  %v2782_v40 = vsub.f32 %v2335_v16, %v936_v59 }
 0x21c   :  { %1476 = vadd.xlane.f32.xlu1 %v1475_v11  ;;  %v2786_v11 = vsub.f32 %v2340_v17, %v935_v10  ;;  %v939_v17 = vmul.f32 0.25, %v2741_v3  ;;  %v941_v3 = vmul.f32 0.25, %v2748_v2 }
 0x21d   :  { %v968_v16 = vmul.f32 %v2782_v40, %v2782_v40 }
 0x21e   :  { %v967_v12 = vmul.f32 %v2786_v11, %v2786_v11  ;;  %v2811_v19 = vsub.f32 %v2368_v21, %v939_v17  ;;  %v2824_v21 = vsub.f32 %v2377_v22, %v941_v3 }
 0x21f   :  { %79 = vadd.xlane.f32.xlu0 %v78_v43  ;;  %v2764_v50 = vpop.xlane.xlu0 %912 }
 0x220   :  { %70 = vadd.xlane.f32.xlu1 %v69_v4  ;;  %v940_v4 = vmul.f32 0.25, %v904_v1  ;;  %v943_v2 = vmul.f32 0.25, %v2764_v50 }
 0x222   :  { %v2805_v1 = vsub.f32 %v2363_v20, %v940_v4  ;;  %v2818_v20 = vsub.f32 %v2382_v23, %v942_v18  ;;  %v2837_v22 = vsub.f32 %v2391_v24, %v943_v2  ;;  %v2154_v2 = vld [vmem:[%s3373_s0 + $0xc8] sm:$0xff] }
 0x223   :  { %1485 = vadd.xlane.f32.xlu0 %v1484_v49  ;;  %v2769_v33 = vpop.xlane.xlu0 %918  ;;  %v986_v49 = vsel %vm32_vm0, %v968_v16, 0.0 }
 0x224   :  { %76 = vadd.xlane.f32.xlu1 %v75_v28  ;;  %v945_v50 = vmul.f32 0.25, %v2769_v33 }
 0x226   :  { %v2850_v24 = vsub.f32 %v2405_v26, %v945_v50 }
 0x227   :  { %1491 = vadd.xlane.f32.xlu0 %v1490_v6  ;;  %v922_v5 = vpop.xlane.xlu0 %921  ;;  %v970_v6 = vmul.f32 %v2791_v62, %v2791_v62 }
 0x228   :  { %1482 = vadd.xlane.f32.xlu1 %v1481_v14  ;;  %v983_v14 = vsel %vm32_vm0, %v967_v12, 0.0  ;;  %v946_v23 = vmul.f32 0.25, %v922_v5  ;;  %v977_v46 = vmul.f32 %v2850_v24, %v2850_v24 }
 0x22b   :  { %1497 = vadd.xlane.f32.xlu0 %v1496_v7  ;;  %v1448_v55 = vpop.permute.xlu0 %1447  ;;  %v992_v7 = vsel %vm32_vm0, %v970_v6, 0.0 }
 0x22c   :  { %v916_v51 = vpop.xlane.xlu1 %915  ;;  %1488 = vadd.xlane.f32.xlu1 %v1487_v15  ;;  %v1508_v0 = vsel %vm32_vm0, %v1448_v55, 0.0  ;;  %v972_v15 = vmul.f32 %v2805_v1, %v2805_v1  ;;  %v971_v55 = vmul.f32 %v2811_v19, %v2811_v19 }
 0x22d   :  { %v944_v42 = vmul.f32 0.25, %v916_v51 }
 0x22e   :  { %v995_v59 = vsel %vm32_vm0, %v971_v55, 0.0 }
 0x22f   :  { %1503 = vadd.xlane.f32.xlu0 %v1502_v54  ;;  %v989_v54 = vsel %vm32_vm0, %v969_v13, 0.0  ;;  %v2831_v51 = vsub.f32 %v2396_v25, %v944_v42  ;;  %v2844_v25 = vsub.f32 %v2410_v27, %v946_v23 }
 0x230   :  { %v1446_v41 = vpop.permute.xlu1 %1445  ;;  %1494 = vadd.xlane.f32.xlu1 %v1493_v8  ;;  %v998_v8 = vsel %vm32_vm0, %v972_v15, 0.0 }
 0x231   :  { %v1505_v56 = vsel %vm32_vm0, %v1446_v41, 0.0  ;;  %v974_v41 = vmul.f32 %v2818_v20, %v2818_v20  ;;  %v976_v10 = vmul.f32 %v2831_v51, %v2831_v51  ;;  %v978_v27 = vmul.f32 %v2844_v25, %v2844_v25 }
 0x233   :  { %1509 = vadd.xlane.f32.xlu0 %v1508_v0  ;;  %v973_v0 = vmul.f32 %v2824_v21, %v2824_v21  ;;  %v1004_v5 = vsel %vm32_vm0, %v974_v41, 0.0  ;;  %v1016_v26 = vsel %vm32_vm0, %v978_v27, 0.0 }
 0x234   :  { %v1450_v32 = vpop.permute.xlu1 %1449  ;;  %1500 = vadd.xlane.f32.xlu1 %v1499_v9  ;;  %v975_v9 = vmul.f32 %v2837_v22, %v2837_v22 }
 0x235   :  { %v1511_v63 = vsel %vm32_vm0, %v1450_v32, 0.0  ;;  %v1001_v33 = vsel %vm32_vm0, %v973_v0, 0.0  ;;  %v1010_v32 = vsel %vm32_vm0, %v976_v10, 0.0  ;;  %v2155_v0 = vld [vmem:[%s3373_s0 + $0xe8] sm:$0xff] }
 0x236   :  { %v1007_v30 = vsel %vm32_vm0, %v975_v9, 0.0 }
 0x238   :  { %v1452_v43 = vpop.permute.xlu1 %1451  ;;  %1506 = vadd.xlane.f32.xlu1 %v1505_v56  ;;  %v1013_v56 = vsel %vm32_vm0, %v977_v46, 0.0 }
 0x239   :  { %v1514_v28 = vsel %vm32_vm0, %v1452_v43, 0.0 }
 0x23a   :  { %1515 = vadd.xlane.f32.xlu0 %v1514_v28  ;;  %v1843_v28 = vld [vmem:[%s3374_s1 + $0x4] sm:$0x3] }
 0x23b   :  { %2020 = vmatprep.subr.msk.bf16.mxu0 %vm645_vm1, %v1843_v28  ;;  %v1130_v16 = vsel %vm645_vm1, %v1843_v28, 0 }
 0x23c   :  { %1512 = vadd.xlane.f32.xlu1 %v1511_v63  ;;  %1935 = vmatpush3.bf16.msra.mxu0 %v1130_v16 }
 0x23e   :  { %987 = vadd.xlane.f32.xlu0 %v986_v49 }
 0x240   :  { %984 = vadd.xlane.f32.xlu1 %v983_v14 }
 0x242   :  { %993 = vadd.xlane.f32.xlu0 %v992_v7 }
 0x244   :  { %990 = vadd.xlane.f32.xlu1 %v989_v54 }
 0x246   :  { %999 = vadd.xlane.f32.xlu0 %v998_v8 }
 0x248   :  { %996 = vadd.xlane.f32.xlu1 %v995_v59 }
 0x24a   :  { %1005 = vadd.xlane.f32.xlu0 %v1004_v5 }
 0x24c   :  { %1002 = vadd.xlane.f32.xlu1 %v1001_v33 }
 0x24e   :  { %1011 = vadd.xlane.f32.xlu0 %v1010_v32 }
 0x250   :  { %1008 = vadd.xlane.f32.xlu1 %v1007_v30 }
 0x252   :  { %1017 = vadd.xlane.f32.xlu0 %v1016_v26 }
 0x254   :  { %1014 = vadd.xlane.f32.xlu1 %v1013_v56 }
 0x25c   :  { %v477_v43 = vpop.xlane.xlu0 %476 }
 0x260   :  { %v483_v4 = vpop.xlane.xlu0 %482 }
 0x264   :  { %v486_v17 = vpop.xlane.xlu0 %485 }
 0x268   :  { %v928_v63 = vpop.xlane.xlu0 %927 }
 0x269   :  { %v948_v12 = vmul.f32 0.25, %v928_v63  ;;  %v480_v18 = vpop.xlane.xlu1 %479 }
 0x26b   :  { %v2869_v49 = vsub.f32 %v2424_v29, %v948_v12 }
 0x26c   :  { %v934_v6 = vpop.xlane.xlu0 %933 }
 0x26d   :  { %v950_v3 = vmul.f32 0.25, %v934_v6  ;;  %v925_v14 = vpop.xlane.xlu1 %924  ;;  %v980_v13 = vmul.f32 %v2869_v49, %v2869_v49  ;;  %v2156_v6 = vld [vmem:[%s3373_s0 + $0x10] sm:$0xff] }
 0x26e   :  { %v947_v42 = vmul.f32 0.25, %v925_v14  ;;  %v523_v14 = vmul.f32 0.25, %v477_v43 }
 0x26f   :  { %v2874_v7 = vsub.f32 %v2438_v31, %v950_v3  ;;  %v1022_v15 = vsel %vm32_vm0, %v980_v13, 0.0 }
 0x270   :  { %v2880_v54 = vsub.f32 %v2154_v2, %v947_v42  ;;  %1023 = vadd.xlane.f32.xlu0 %v1022_v15  ;;  %v492_v29 = vpop.xlane.xlu0 %491  ;;  %v526_v15 = vmul.f32 0.25, %v486_v17  ;;  %v2158_v17 = vld [vmem:[%s3373_s0] sm:$0xff] }
 0x271   :  { %v528_v55 = vmul.f32 0.25, %v492_v29  ;;  %v931_v23 = vpop.xlane.xlu1 %930  ;;  %v982_v8 = vmul.f32 %v2874_v7, %v2874_v7 }
 0x272   :  { %v949_v41 = vmul.f32 0.25, %v931_v23  ;;  %v979_v31 = vmul.f32 %v2880_v54, %v2880_v54  ;;  %v524_v23 = vmul.f32 0.25, %v480_v18 }
 0x273   :  { %v1028_v50 = vsel %vm32_vm0, %v982_v8, 0.0  ;;  %v544_v59 = vadd.f32 1e-05, %v528_v55 }
 0x274   :  { %v2890_v5 = vsub.f32 %v2155_v0, %v949_v41  ;;  %1029 = vadd.xlane.f32.xlu0 %v1028_v50  ;;  %v498_v10 = vpop.xlane.xlu0 %497  ;;  %v1019_v33 = vsel %vm32_vm0, %v979_v31, 0.0  ;;  %v525_v41 = vmul.f32 0.25, %v483_v4  ;;  %v2157_v31 = vld [vmem:[%s3373_s0 + $0x30] sm:$0xff] }
 0x275   :  { %v530_v9 = vmul.f32 0.25, %v498_v10  ;;  %v489_v32 = vpop.xlane.xlu1 %488  ;;  %1020 = vadd.xlane.f32.xlu1 %v1019_v33  ;;  %2026 = vrsqrt.f32 %v544_v59  ;;  %v539_v59 = vadd.f32 1e-05, %v523_v14  ;;  %v542_v10 = vadd.f32 1e-05, %v526_v15 }
 0x276   :  { %v527_v27 = vmul.f32 0.25, %v489_v32  ;;  %v981_v30 = vmul.f32 %v2890_v5, %v2890_v5 }
 0x277   :  { %v546_v46 = vadd.f32 1e-05, %v530_v9 }
 0x278   :  { %v543_v26 = vadd.f32 1e-05, %v527_v27  ;;  %v38_v56 = vpop.xlane.xlu0 %37  ;;  %v1025_v28 = vsel %vm32_vm0, %v981_v30, 0.0  ;;  %v540_v27 = vadd.f32 1e-05, %v524_v23 }
 0x279   :  { %v83_v16 = vmul.f32 0.25, %v38_v56  ;;  %v495_v63 = vpop.xlane.xlu1 %494  ;;  %1026 = vadd.xlane.f32.xlu1 %v1025_v28 }
 0x27a   :  { %2028 = vrsqrt.f32 %v543_v26  ;;  %v529_v12 = vmul.f32 0.25, %v495_v63  ;;  %v541_v26 = vadd.f32 1e-05, %v525_v41  ;;  %v2159_v63 = vld [vmem:[%s3373_s0 + $0x20] sm:$0xff] }
 0x27b   :  { %v2899_v3 = vsub.f32 %v2156_v6, %v83_v16  ;;  %2030 = vrsqrt.f32 %v546_v46 }
 0x27c   :  { %v545_v13 = vadd.f32 1e-05, %v529_v12  ;;  %v44_v42 = vpop.xlane.xlu0 %43 }
 0x27d   :  { %v85_v2 = vmul.f32 0.25, %v44_v42  ;;  %v35_v29 = vpop.xlane.xlu1 %34  ;;  %v115_v55 = vmul.f32 %v2899_v3, %v2899_v3 }
 0x27e   :  { %2032 = vrsqrt.f32 %v545_v13  ;;  %v82_v8 = vmul.f32 0.25, %v35_v29 }
 0x27f   :  { %v2906_v50 = vsub.f32 %v2157_v31, %v85_v2  ;;  %v133_v43 = vsel %vm32_vm0, %v115_v55, 0.0  ;;  %v2027_v32 = vpop.eup %2026  ;;  %2034 = vrsqrt.f32 %v539_v59 }
 0x280   :  { %v2912_v0 = vsub.f32 %v2158_v17, %v82_v8  ;;  %134 = vadd.xlane.f32.xlu0 %v133_v43  ;;  %v504_v18 = vpop.xlane.xlu0 %503  ;;  %2036 = vrsqrt.f32 %v542_v10  ;;  %v2929_v2 = vmul.f32 %v2027_v32, %v2513_v60 }
 0x281   :  { %v532_v33 = vmul.f32 0.25, %v504_v18  ;;  %v41_v4 = vpop.xlane.xlu1 %40  ;;  %v117_v9 = vmul.f32 %v2906_v50, %v2906_v50  ;;  %2038 = vrsqrt.f32 %v540_v27 }
 0x282   :  { %v84_v30 = vmul.f32 0.25, %v41_v4  ;;  %v114_v46 = vmul.f32 %v2912_v0, %v2912_v0  ;;  %2040 = vrsqrt.f32 %v541_v26 }
 0x283   :  { %v139_v56 = vsel %vm32_vm0, %v117_v9, 0.0  ;;  %v548_v16 = vadd.f32 1e-05, %v532_v33 }
 0x284   :  { %v2029_v28 = vpop.eup %2028  ;;  %v2922_v12 = vsub.f32 %v2159_v63, %v84_v30  ;;  %140 = vadd.xlane.f32.xlu0 %v139_v56  ;;  %v510_v6 = vpop.xlane.xlu0 %509  ;;  %v130_v14 = vsel %vm32_vm0, %v114_v46, 0.0 }
 0x285   :  { %v534_v13 = vmul.f32 0.25, %v510_v6  ;;  %131 = vadd.xlane.f32.xlu1 %v130_v14  ;;  %v501_v42 = vpop.xlane.xlu1 %500  ;;  %v2926_v15 = vmul.f32 %v2029_v28, %v2505_v53  ;;  %v2031_v29 = vpop.eup %2030  ;;  %2042 = vrsqrt.f32 %v548_v16 }
 0x286   :  { %v531_v55 = vmul.f32 0.25, %v501_v42  ;;  %v116_v23 = vmul.f32 %v2922_v12, %v2922_v12  ;;  %v2942_v18 = vmul.f32 %v2031_v29, %v2525_v36 }
 0x287   :  { %v550_v31 = vadd.f32 1e-05, %v534_v13 }
 0x288   :  { %v2033_v41 = vpop.eup %2032  ;;  %v547_v43 = vadd.f32 1e-05, %v531_v55  ;;  %v2935_v59 = vpop.xlane.xlu0 %49  ;;  %v136_v53 = vsel %vm32_vm0, %v116_v23, 0.0 }
 0x289   :  { %137 = vadd.xlane.f32.xlu1 %v136_v53  ;;  %v507_v60 = vpop.xlane.xlu1 %506  ;;  %v2939_v17 = vmul.f32 %v2033_v41, %v2517_v61  ;;  %v2035_v27 = vpop.eup %2034 }
 0x28a   :  { %2044 = vrsqrt.f32 %v547_v43  ;;  %v533_v10 = vmul.f32 0.25, %v507_v60  ;;  %v2037_v30 = vpop.eup %2036  ;;  %v571_v42 = vmul.f32 %v2035_v27, %v2485_v38  ;;  %v1810_v38 = vld [vmem:[%s3374_s1 + $0x2] sm:$0x3] }
 0x28b   :  { %2046 = vrsqrt.f32 %v550_v31  ;;  %v2039_v46 = vpop.eup %2038  ;;  %v574_v16 = vmul.f32 %v2037_v30, %v2501_v52  ;;  %2018 = vmatprep.subr.msk.bf16.mxu1 %vm645_vm1, %v1810_v38 }
 0x28c   :  { %v549_v4 = vadd.f32 1e-05, %v533_v10  ;;  %v2946_v9 = vpop.xlane.xlu0 %55  ;;  %v2041_v26 = vpop.eup %2040  ;;  %v572_v63 = vmul.f32 %v2039_v46, %v2494_v45 }
 0x28d   :  { %v2948_v32 = vpop.xlane.xlu1 %46  ;;  %v573_v23 = vmul.f32 %v2041_v26, %v2490_v44 }
 0x28e   :  { %2048 = vrsqrt.f32 %v549_v4  ;;  %v587_v60 = vpack.c.bf16 %v572_v63, %v571_v42 }
 0x28f   :  { %v2043_v28 = vpop.eup %2042  ;;  %v588_v52 = vpack.c.bf16 %v574_v16, %v573_v23 }
 0x290   :  { %v516_v61 = vpop.xlane.xlu0 %515  ;;  %v2960_v31 = vmul.f32 %v2043_v28, %v2537_v47  ;;  %v647_v47 = vsel %vm645_vm1, %v1810_v38, 0 }
 0x291   :  { %v536_v56 = vmul.f32 0.25, %v516_v61  ;;  %v2950_v36 = vpop.xlane.xlu1 %52  ;;  %1899 = vmatpush3.bf16.msra.mxu1 %v647_v47 }
 0x293   :  { %v552_v14 = vadd.f32 1e-05, %v536_v56 }
 0x294   :  { %v2045_v6 = vpop.eup %2044  ;;  %v522_v13 = vpop.xlane.xlu0 %521 }
 0x295   :  { %v538_v29 = vmul.f32 0.25, %v522_v13  ;;  %v513_v55 = vpop.xlane.xlu1 %512  ;;  %v2957_v41 = vmul.f32 %v2045_v6, %v2529_v37  ;;  %v2047_v43 = vpop.eup %2046  ;;  %2050 = vrsqrt.f32 %v552_v14 }
 0x296   :  { %v535_v53 = vmul.f32 0.25, %v513_v55  ;;  %v2975_v46 = vmul.f32 %v2047_v43, %v2549_v57 }
 0x297   :  { %v554_v44 = vadd.f32 1e-05, %v538_v29 }
 0x298   :  { %v2049_v10 = vpop.eup %2048  ;;  %v551_v4 = vadd.f32 1e-05, %v535_v53  ;;  %v2967_v37 = vpop.xlane.xlu0 %61 }
 0x299   :  { %v519_v27 = vpop.xlane.xlu1 %518  ;;  %v2972_v30 = vmul.f32 %v2049_v10, %v2541_v48 }
 0x29a   :  { %2052 = vrsqrt.f32 %v551_v4  ;;  %v537_v61 = vmul.f32 0.25, %v519_v27  ;;  %607 = vrot.lane.b32.xlu0 %v588_v52, %s2196_s16  ;;  %605 = vrot.lane.b32.xlu1 %v587_v60, %s2196_s16 }
 0x29b   :  { %2054 = vrsqrt.f32 %v554_v44 }
 0x29c   :  { %v553_v56 = vadd.f32 1e-05, %v537_v61  ;;  %v2981_v28 = vpop.xlane.xlu0 %67 }
 0x29d   :  { %v2983_v16 = vpop.xlane.xlu1 %58 }
 0x29e   :  { %2056 = vrsqrt.f32 %v553_v56 }
 0x29f   :  { %v2051_v6 = vpop.eup %2050 }
 0x2a0   :  { %v1474_v48 = vpop.xlane.xlu0 %1473  ;;  %v2991_v43 = vmul.f32 %v2051_v6, %v2561_v35  ;;  %v87_v35 = vmul.f32 0.25, %v2935_v59  ;;  %v86_v59 = vmul.f32 0.25, %v2948_v32 }
 0x2a1   :  { %v1518_v57 = vmul.f32 0.25, %v1474_v48  ;;  %v2985_v63 = vpop.xlane.xlu1 %64 }
 0x2a3   :  { %v1534_v13 = vadd.f32 1e-05, %v1518_v57 }
 0x2a4   :  { %v2053_v14 = vpop.eup %2052  ;;  %v1480_v42 = vpop.xlane.xlu0 %1479 }
 0x2a5   :  { %v1520_v29 = vmul.f32 0.25, %v1480_v42  ;;  %v1471_v55 = vpop.xlane.xlu1 %1470  ;;  %v2988_v23 = vmul.f32 %v2053_v14, %v2553_v58  ;;  %v2055_v53 = vpop.eup %2054  ;;  %2058 = vrsqrt.f32 %v1534_v13  ;;  %v3422_v58 = vld [vmem:[#allocation5_spill] sm:$0xff]  ;;  %v89_v42 = vmul.f32 0.25, %v2946_v9 }
 0x2a6   :  { %v1517_v52 = vmul.f32 0.25, %v1471_v55  ;;  %v3001_v61 = vmul.f32 %v2055_v53, %v3422_v58  ;;  %v2162_v9 = vld [vmem:[%s3373_s0 + $0x40] sm:$0xff] }
 0x2a7   :  { %v1536_v10 = vadd.f32 1e-05, %v1520_v29  ;;  %v3029_v32 = vsub.f32 %v2162_v9, %v86_v59 }
 0x2a8   :  { %v2057_v38 = vpop.eup %2056  ;;  %v1533_v44 = vadd.f32 1e-05, %v1517_v52  ;;  %v2995_v4 = vpop.xlane.xlu0 %73 }
 0x2a9   :  { %v1477_v47 = vpop.xlane.xlu1 %1476  ;;  %v2998_v27 = vmul.f32 %v2057_v38, %v2565_v39  ;;  %v2160_v39 = vld [vmem:[%s3373_s0 + $0x50] sm:$0xff]  ;;  %3425 = vst [vmem:[#allocation23_spill] sm:$0xff] %v3029_v32 }
 0x2aa   :  { %2060 = vrsqrt.f32 %v1533_v44  ;;  %v1519_v56 = vmul.f32 0.25, %v1477_v47  ;;  %v3013_v13 = vsub.f32 %v2160_v39, %v87_v35  ;;  %v2161_v38 = vld [vmem:[%s3373_s0 + $0x70] sm:$0xff] }
 0x2ab   :  { %2062 = vrsqrt.f32 %v1536_v10  ;;  %v3022_v10 = vsub.f32 %v2161_v38, %v89_v42  ;;  %v3427_v42 = vld [vmem:[#allocation7_spill] sm:$0xff] }
 0x2ac   :  { %v1535_v57 = vadd.f32 1e-05, %v1519_v56  ;;  %v3006_v6 = vpop.xlane.xlu0 %79  ;;  %3423 = vst [vmem:[#allocation5_spill] sm:$0xff] %v3013_v13  ;;  %v119_v44 = vmul.f32 %v3013_v13, %v3013_v13  ;;  %v88_v56 = vmul.f32 0.25, %v2950_v36 }
 0x2ad   :  { %v3008_v14 = vpop.xlane.xlu1 %70  ;;  %3424 = vst [vmem:[#allocation22_spill] sm:$0xff] %v3022_v10  ;;  %v121_v59 = vmul.f32 %v3022_v10, %v3022_v10 }
 0x2ae   :  { %2064 = vrsqrt.f32 %v1535_v57  ;;  %v145_v26 = vsel %vm32_vm0, %v119_v44, 0.0 }
 0x2af   :  { %v2059_v52 = vpop.eup %2058 }
 0x2b0   :  { %v1486_v29 = vpop.xlane.xlu0 %1485  ;;  %v3036_v38 = vmul.f32 %v2059_v52, %v3427_v42  ;;  %v2163_v52 = vld [vmem:[%s3373_s0 + $0x60] sm:$0xff]  ;;  %v3429_v42 = vld [vmem:[#allocation8_spill] sm:$0xff] }
 0x2b1   :  { %v1522_v55 = vmul.f32 0.25, %v1486_v29  ;;  %v3017_v53 = vpop.xlane.xlu1 %76  ;;  %v3426_v29 = vld [vmem:[#allocation6_spill] sm:$0xff] }
 0x2b3   :  { %v1538_v58 = vadd.f32 1e-05, %v1522_v55  ;;  %v3431_v55 = vld [vmem:[#allocation9_spill] sm:$0xff] }
 0x2b4   :  { %v2061_v47 = vpop.eup %2060  ;;  %v1492_v35 = vpop.xlane.xlu0 %1491 }
 0x2b5   :  { %v1524_v57 = vmul.f32 0.25, %v1492_v35  ;;  %v1483_v39 = vpop.xlane.xlu1 %1482  ;;  %v3033_v60 = vmul.f32 %v2061_v47, %v3426_v29  ;;  %v2063_v48 = vpop.eup %2062  ;;  %2066 = vrsqrt.f32 %v1538_v58  ;;  %v118_v47 = vmul.f32 %v3029_v32, %v3029_v32 }
 0x2b6   :  { %v1521_v45 = vmul.f32 0.25, %v1483_v39  ;;  %v3048_v39 = vsub.f32 %v2163_v52, %v88_v56  ;;  %v3054_v58 = vmul.f32 %v2063_v48, %v3431_v55 }
 0x2b7   :  { %v1540_v36 = vadd.f32 1e-05, %v1524_v57  ;;  %v151_v57 = vsel %vm32_vm0, %v121_v59, 0.0 }
 0x2b8   :  { %v2065_v9 = vpop.eup %2064  ;;  %v1537_v35 = vadd.f32 1e-05, %v1521_v45  ;;  %v1498_v8 = vpop.xlane.xlu0 %1497  ;;  %3428 = vst [vmem:[#allocation6_spill] sm:$0xff] %v3048_v39  ;;  %3432 = vst [vmem:[#allocation8_spill] sm:$0xff] %v3054_v58  ;;  %v120_v48 = vmul.f32 %v3048_v39, %v3048_v39 }
 0x2b9   :  { %v1526_v44 = vmul.f32 0.25, %v1498_v8  ;;  %146 = vadd.xlane.f32.xlu0 %v145_v26  ;;  %v1489_v29 = vpop.xlane.xlu1 %1488  ;;  %v3051_v33 = vmul.f32 %v2065_v9, %v3429_v42  ;;  %v142_v9 = vsel %vm32_vm0, %v118_v47, 0.0 }
 0x2ba   :  { %2068 = vrsqrt.f32 %v1537_v35  ;;  %v1523_v45 = vmul.f32 0.25, %v1489_v29 }
 0x2bb   :  { %3430 = vst [vmem:[#allocation7_spill] sm:$0xff] %v3051_v33  ;;  %2070 = vrsqrt.f32 %v1540_v36  ;;  %v1542_v13 = vadd.f32 1e-05, %v1526_v44  ;;  %v148_v44 = vsel %vm32_vm0, %v120_v48, 0.0  ;;  %v3439_v33 = vld [vmem:[#allocation14_spill] sm:$0xff] }
 0x2bc   :  { %v1539_v56 = vadd.f32 1e-05, %v1523_v45  ;;  %v1504_v52 = vpop.xlane.xlu0 %1503 }
 0x2bd   :  { %v1528_v8 = vmul.f32 0.25, %v1504_v52  ;;  %152 = vadd.xlane.f32.xlu0 %v151_v57  ;;  %v1495_v26 = vpop.xlane.xlu1 %1494 }
 0x2be   :  { %2072 = vrsqrt.f32 %v1539_v56  ;;  %v1525_v55 = vmul.f32 0.25, %v1495_v26  ;;  %143 = vadd.xlane.f32.xlu1 %v142_v9  ;;  %v3433_v56 = vld [vmem:[#allocation10_spill] sm:$0xff] }
 0x2bf   :  { %2074 = vrsqrt.f32 %v1542_v13  ;;  %v1544_v59 = vadd.f32 1e-05, %v1528_v8  ;;  %v2067_v45 = vpop.eup %2066  ;;  %v3434_v13 = vld [vmem:[#allocation11_spill] sm:$0xff] }
 0x2c0   :  { %v1541_v35 = vadd.f32 1e-05, %v1525_v55  ;;  %v1510_v29 = vpop.xlane.xlu0 %1509  ;;  %v3067_v8 = vmul.f32 %v2067_v45, %v3434_v13 }
 0x2c1   :  { %v1530_v42 = vmul.f32 0.25, %v1510_v29  ;;  %v1501_v36 = vpop.xlane.xlu1 %1500 }
 0x2c2   :  { %2076 = vrsqrt.f32 %v1541_v35  ;;  %v1527_v57 = vmul.f32 0.25, %v1501_v36  ;;  %149 = vadd.xlane.f32.xlu1 %v148_v44  ;;  %v3435_v44 = vld [vmem:[#allocation12_spill] sm:$0xff] }
 0x2c3   :  { %2078 = vrsqrt.f32 %v1544_v59  ;;  %v1546_v47 = vadd.f32 1e-05, %v1530_v42 }
 0x2c4   :  { %v2069_v52 = vpop.eup %2068  ;;  %v1543_v10 = vadd.f32 1e-05, %v1527_v57 }
 0x2c5   :  { %v1507_v39 = vpop.xlane.xlu1 %1506  ;;  %v3064_v26 = vmul.f32 %v2069_v52, %v3433_v56  ;;  %v2071_v9 = vpop.eup %2070  ;;  %v3437_v52 = vld [vmem:[#allocation13_spill] sm:$0xff] }
 0x2c6   :  { %2080 = vrsqrt.f32 %v1543_v10  ;;  %v1529_v55 = vmul.f32 0.25, %v1507_v39  ;;  %v3075_v56 = vmul.f32 %v2071_v9, %v3437_v52 }
 0x2c7   :  { %v1516_v29 = vpop.xlane.xlu0 %1515  ;;  %2082 = vrsqrt.f32 %v1546_v47 }
 0x2c8   :  { %v2073_v35 = vpop.eup %2072  ;;  %v1545_v36 = vadd.f32 1e-05, %v1529_v55  ;;  %v1532_v59 = vmul.f32 0.25, %v1516_v29  ;;  %3438 = vst [vmem:[#allocation10_spill] sm:$0xff] %v3075_v56 }
 0x2c9   :  { %v1513_v42 = vpop.xlane.xlu1 %1512  ;;  %v3072_v57 = vmul.f32 %v2073_v35, %v3435_v44  ;;  %v2075_v45 = vpop.eup %2074  ;;  %v3440_v35 = vld [vmem:[#allocation15_spill] sm:$0xff] }
 0x2ca   :  { %2084 = vrsqrt.f32 %v1545_v36  ;;  %v1548_v13 = vadd.f32 1e-05, %v1532_v59  ;;  %v1531_v10 = vmul.f32 0.25, %v1513_v42  ;;  %v3083_v44 = vmul.f32 %v2075_v45, %v3440_v35 }
 0x2cb   :  { %3436 = vst [vmem:[#allocation9_spill] sm:$0xff] %v3072_v57  ;;  %v988_v39 = vpop.xlane.xlu0 %987  ;;  %v3441_v57 = vld [vmem:[#allocation16_spill] sm:$0xff] }
 0x2cc   :  { %v2077_v48 = vpop.eup %2076  ;;  %2086 = vrsqrt.f32 %v1548_v13  ;;  %v1547_v47 = vadd.f32 1e-05, %v1531_v10  ;;  %v1032_v55 = vmul.f32 0.25, %v988_v39 }
 0x2cd   :  { %v985_v29 = vpop.xlane.xlu1 %984  ;;  %v3080_v58 = vmul.f32 %v2077_v48, %v3439_v33  ;;  %v2079_v9 = vpop.eup %2078  ;;  %v3443_v33 = vld [vmem:[#allocation17_spill] sm:$0xff] }
 0x2ce   :  { %2088 = vrsqrt.f32 %v1547_v47  ;;  %v1048_v36 = vadd.f32 1e-05, %v1032_v55  ;;  %v1031_v59 = vmul.f32 0.25, %v985_v29  ;;  %v3091_v48 = vmul.f32 %v2079_v9, %v3443_v33 }
 0x2cf   :  { %v994_v42 = vpop.xlane.xlu0 %993  ;;  %v3445_v29 = vpack.c.bf16 %v2942_v18, %v2939_v17 }
 0x2d0   :  { %v2081_v32 = vpop.eup %2080  ;;  %2090 = vrsqrt.f32 %v1048_v36  ;;  %v1047_v13 = vadd.f32 1e-05, %v1031_v59  ;;  %v1034_v10 = vmul.f32 0.25, %v994_v42  ;;  %3444 = vst [vmem:[#allocation12_spill] sm:$0xff] %v3091_v48  ;;  %v3446_v36 = vpack.c.bf16 %v2929_v2, %v2926_v15 }
 0x2d1   :  { %v991_v39 = vpop.xlane.xlu1 %990  ;;  %v3088_v56 = vmul.f32 %v2081_v32, %v3441_v57  ;;  %v2083_v45 = vpop.eup %2082  ;;  %v3450_v32 = vld [vmem:[#allocation20_spill] sm:$0xff] }
 0x2d2   :  { %2092 = vrsqrt.f32 %v1047_v13  ;;  %v1050_v47 = vadd.f32 1e-05, %v1034_v10  ;;  %v1033_v55 = vmul.f32 0.25, %v991_v39  ;;  %v3447_v13 = vld [vmem:[#allocation18_spill] sm:$0xff]  ;;  %v3449_v39 = vld [vmem:[#allocation19_spill] sm:$0xff] }
 0x2d3   :  { %3442 = vst [vmem:[#allocation11_spill] sm:$0xff] %v3088_v56  ;;  %611 = vrot.lane.b32.xlu0 %v3445_v29, %s2196_s16  ;;  %v1000_v35 = vpop.xlane.xlu0 %999  ;;  %609 = vrot.lane.b32.xlu1 %v3446_v36, %s2196_s16  ;;  %v3107_v17 = vmul.f32 %v2083_v45, %v3449_v39 }
 0x2d4   :  { %v2085_v57 = vpop.eup %2084  ;;  %2094 = vrsqrt.f32 %v1050_v47  ;;  %v1049_v9 = vadd.f32 1e-05, %v1033_v55  ;;  %v1036_v59 = vmul.f32 0.25, %v1000_v35 }
 0x2d5   :  { %v997_v42 = vpop.xlane.xlu1 %996  ;;  %v3104_v10 = vmul.f32 %v2085_v57, %v3447_v13  ;;  %v3451_v57 = vld [vmem:[#allocation21_spill] sm:$0xff] }
 0x2d6   :  { %v2087_v18 = vpop.eup %2086  ;;  %2096 = vrsqrt.f32 %v1049_v9  ;;  %v1052_v33 = vadd.f32 1e-05, %v1036_v59  ;;  %v1035_v29 = vmul.f32 0.25, %v997_v42 }
 0x2d7   :  { %3448 = vst [vmem:[#allocation13_spill] sm:$0xff] %v3104_v10  ;;  %v1006_v15 = vpop.xlane.xlu0 %1005  ;;  %v3115_v13 = vmul.f32 %v2087_v18, %v3451_v57 }
 0x2d8   :  { %v2089_v36 = vpop.eup %2088  ;;  %2098 = vrsqrt.f32 %v1052_v33  ;;  %v1051_v47 = vadd.f32 1e-05, %v1035_v29  ;;  %v1038_v55 = vmul.f32 0.25, %v1006_v15 }
 0x2d9   :  { %v1003_v35 = vpop.xlane.xlu1 %1002  ;;  %v3112_v52 = vmul.f32 %v2089_v36, %v3450_v32 }
 0x2da   :  { %v2091_v45 = vpop.eup %2090  ;;  %2100 = vrsqrt.f32 %v1051_v47  ;;  %v1054_v9 = vadd.f32 1e-05, %v1038_v55  ;;  %v1037_v59 = vmul.f32 0.25, %v1003_v35 }
 0x2db   :  { %v1012_v42 = vpop.xlane.xlu0 %1011  ;;  %v1588_v39 = vpack.c.bf16 %v3115_v13, %v3112_v52  ;;  %v1080_v32 = vmul.f32 %v2091_v45, %v2782_v40 }
 0x2dc   :  { %v2093_v2 = vpop.eup %2092  ;;  %2102 = vrsqrt.f32 %v1054_v9  ;;  %v1053_v33 = vadd.f32 1e-05, %v1037_v59  ;;  %v1040_v29 = vmul.f32 0.25, %v1012_v42 }
 0x2dd   :  { %v1009_v15 = vpop.xlane.xlu1 %1008  ;;  %v1079_v56 = vmul.f32 %v2093_v2, %v2786_v11 }
 0x2de   :  { %v2095_v36 = vpop.eup %2094  ;;  %2104 = vrsqrt.f32 %v1053_v33  ;;  %v1056_v18 = vadd.f32 1e-05, %v1040_v29  ;;  %v1039_v57 = vmul.f32 0.25, %v1009_v15 }
 0x2df   :  { %v1018_v47 = vpop.xlane.xlu0 %1017  ;;  %v1095_v55 = vpack.c.bf16 %v1080_v32, %v1079_v56  ;;  %v1082_v42 = vmul.f32 %v2095_v36, %v2791_v62  ;;  %v91_v56 = vmul.f32 0.25, %v2967_v37  ;;  %v93_v36 = vmul.f32 0.25, %v2981_v28 }
 0x2e0   :  { %v2097_v35 = vpop.eup %2096  ;;  %2106 = vrsqrt.f32 %v1056_v18  ;;  %v1055_v48 = vadd.f32 1e-05, %v1039_v57  ;;  %v1042_v10 = vmul.f32 0.25, %v1018_v47 }
 0x2e1   :  { %1936 = vmatprep.mubr.msk.bf16.mxu0 %vm32_vm0, %v1095_v55  ;;  %v1015_v9 = vpop.xlane.xlu1 %1014  ;;  %v1081_v59 = vmul.f32 %v2097_v35, %v2797_v34  ;;  %v2165_v35 = vld [vmem:[%s3373_s0 + $0xb0] sm:$0xff] }
 0x2e2   :  { %v2099_v11 = vpop.eup %2098  ;;  %2108 = vrsqrt.f32 %v1055_v48  ;;  %v1058_v40 = vadd.f32 1e-05, %v1042_v10  ;;  %v1041_v2 = vmul.f32 0.25, %v1015_v9  ;;  %v2164_v48 = vld [vmem:[%s3373_s0 + $0x90] sm:$0xff]  ;;  %v3141_v9 = vsub.f32 %v2165_v35, %v93_v36 }
 0x2e3   :  { %v1096_v45 = vpack.c.bf16 %v1082_v42, %v1081_v59  ;;  %v1084_v32 = vmul.f32 %v2099_v11, %v2805_v1  ;;  %v3131_v10 = vsub.f32 %v2164_v48, %v91_v56  ;;  %v90_v1 = vmul.f32 0.25, %v2983_v16  ;;  %v2166_v16 = vld [vmem:[%s3373_s0 + $0x80] sm:$0xff] }
 0x2e4   :  { %v2101_v33 = vpop.eup %2100  ;;  %2110 = vrsqrt.f32 %v1058_v40  ;;  %v1057_v29 = vadd.f32 1e-05, %v1041_v2  ;;  %v92_v11 = vmul.f32 0.25, %v2985_v63 }
 0x2e5   :  { %1937 = vmatmul.mubr.msk.bf16.vlgmr.msra.gmra.mrb[0].mxu0 %vm32_vm0, %v1096_v45  ;;  %v1083_v15 = vmul.f32 %v2101_v33, %v2811_v19  ;;  %v3151_v42 = vsub.f32 %v2166_v16, %v90_v1  ;;  %v125_v33 = vmul.f32 %v3141_v9, %v3141_v9 }
 0x2e6   :  { %v2103_v18 = vpop.eup %2102  ;;  %2112 = vrsqrt.f32 %v1057_v29  ;;  %v2167_v29 = vld [vmem:[%s3373_s0 + $0xa0] sm:$0xff] }
 0x2e7   :  { %v1097_v34 = vpack.c.bf16 %v1084_v32, %v1083_v15  ;;  %v1086_v19 = vmul.f32 %v2103_v18, %v2818_v20  ;;  %v123_v20 = vmul.f32 %v3131_v10, %v3131_v10  ;;  %v3163_v56 = vsub.f32 %v2167_v29, %v92_v11  ;;  %v250_v11 = vld [vmem:[%s3374_s1] sm:$0x3] }
 0x2e8   :  { %v2105_v62 = vpop.eup %2104  ;;  %v122_v63 = vmul.f32 %v3151_v42, %v3151_v42  ;;  %2019 = vmatprep.subr.msk.bf16.mxu1 %vm645_vm1, %v250_v11 }
 0x2e9   :  { %1940 = vmatprep.mubr.msk.bf16.mxu0 %vm32_vm0, %v1097_v34  ;;  %v1085_v37 = vmul.f32 %v2105_v62, %v2824_v21  ;;  %v124_v32 = vmul.f32 %v3163_v56, %v3163_v56 }
 0x2ea   :  { %v2107_v57 = vpop.eup %2106 }
 0x2eb   :  { %v1098_v47 = vpack.c.bf16 %v1086_v19, %v1085_v37  ;;  %v1088_v59 = vmul.f32 %v2107_v57, %v2831_v51  ;;  %v160_v18 = vsel %vm32_vm0, %v124_v32, 0.0 }
 0x2ec   :  { %v2109_v55 = vpop.eup %2108 }
 0x2ed   :  { %1941 = vmatmul.mubr.msk.bf16.gmra.mrb[4].mxu0 %vm32_vm0, %v1098_v47  ;;  %v1087_v28 = vmul.f32 %v2109_v55, %v2837_v22  ;;  %v157_v22 = vsel %vm32_vm0, %v123_v20, 0.0  ;;  %v3453_v20 = vpack.c.bf16 %v2960_v31, %v2957_v41 }
 0x2ee   :  { %v2111_v21 = vpop.eup %2110 }
 0x2ef   :  { %v1099_v40 = vpack.c.bf16 %v1088_v59, %v1087_v28  ;;  %v1090_v45 = vmul.f32 %v2111_v21, %v2844_v25  ;;  %v154_v25 = vsel %vm32_vm0, %v122_v63, 0.0  ;;  %v3452_v59 = vpack.c.bf16 %v2975_v46, %v2972_v30 }
 0x2f0   :  { %v2113_v2 = vpop.eup %2112 }
 0x2f1   :  { %1944 = vmatprep.mubr.msk.bf16.mxu0 %vm32_vm0, %v1099_v40  ;;  %v1089_v51 = vmul.f32 %v2113_v2, %v2850_v24  ;;  %v163_v24 = vsel %vm32_vm0, %v125_v33, 0.0  ;;  %v1852_v40 = vld [vmem:[%s3374_s1 + $0x6] sm:$0x3] }
 0x2f2   :  { %158 = vadd.xlane.f32.xlu0 %v157_v22  ;;  %2021 = vmatprep.subr.msk.bf16.mxu0 %vm645_vm1, %v1852_v40  ;;  %v1640_v30 = vsel %vm645_vm1, %v1852_v40, 0 }
 0x2f3   :  { %v1100_v15 = vpack.c.bf16 %v1090_v45, %v1089_v51  ;;  %1953 = vmatpush3.bf16.msra.mxu0 %v1640_v30 }
 0x2f5   :  { %1945 = vmatmul.mubr.msk.bf16.gmra.mrb[8].mxu0 %vm32_vm0, %v1100_v15 }
 0x2f6   :  { %164 = vadd.xlane.f32.xlu0 %v163_v24 }
 0x2f7   :  { %155 = vadd.xlane.f32.xlu1 %v154_v25 }
 0x2fb   :  { %161 = vadd.xlane.f32.xlu1 %v160_v18 }
 0x2fd   :  { %v1024_v34 = vpop.xlane.xlu0 %1023 }
 0x2fe   :  { %v1044_v62 = vmul.f32 0.25, %v1024_v34 }
 0x300   :  { %v1060_v48 = vadd.f32 1e-05, %v1044_v62 }
 0x301   :  { %v1030_v36 = vpop.xlane.xlu0 %1029 }
 0x302   :  { %v1046_v37 = vmul.f32 0.25, %v1030_v36  ;;  %v1021_v19 = vpop.xlane.xlu1 %1020  ;;  %2114 = vrsqrt.f32 %v1060_v48 }
 0x303   :  { %v1043_v57 = vmul.f32 0.25, %v1021_v19 }
 0x304   :  { %v1062_v1 = vadd.f32 1e-05, %v1046_v37  ;;  %v771_v37 = vsel %vm645_vm1, %v250_v11, 0 }
 0x305   :  { %v1059_v47 = vadd.f32 1e-05, %v1043_v57 }
 0x306   :  { %v1027_v55 = vpop.xlane.xlu1 %1026 }
 0x307   :  { %2116 = vrsqrt.f32 %v1059_v47  ;;  %v1045_v35 = vmul.f32 0.25, %v1027_v55  ;;  %v97_v55 = vmul.f32 0.25, %v3006_v6 }
 0x308   :  { %2118 = vrsqrt.f32 %v1062_v1  ;;  %v2168_v1 = vld [vmem:[%s3373_s0 + $0xd0] sm:$0xff] }
 0x309   :  { %v1061_v28 = vadd.f32 1e-05, %v1045_v35 }
 0x30b   :  { %2120 = vrsqrt.f32 %v1061_v28 }
 0x30c   :  { %615 = vrot.lane.b32.xlu0 %v3452_v59, %s2196_s16  ;;  %613 = vrot.lane.b32.xlu1 %v3453_v20, %s2196_s16  ;;  %v2115_v2 = vpop.eup %2114  ;;  %v94_v20 = vmul.f32 0.25, %v3008_v14  ;;  %v2170_v14 = vld [vmem:[%s3373_s0 + $0xc0] sm:$0xff] }
 0x30d   :  { %v135_v21 = vpop.xlane.xlu0 %134  ;;  %v1092_v33 = vmul.f32 %v2115_v2, %v2869_v49  ;;  %v96_v2 = vmul.f32 0.25, %v3017_v53 }
 0x30e   :  { %v179_v16 = vmul.f32 0.25, %v135_v21  ;;  %v3231_v40 = vsub.f32 %v2170_v14, %v94_v20 }
 0x310   :  { %v195_v31 = vadd.f32 1e-05, %v179_v16  ;;  %v2169_v16 = vld [vmem:[%s3373_s0 + $0xf0] sm:$0xff] }
 0x311   :  { %v2117_v41 = vpop.eup %2116  ;;  %v141_v46 = vpop.xlane.xlu0 %140  ;;  %v3218_v11 = vsub.f32 %v2169_v16, %v97_v55 }
 0x312   :  { %v181_v22 = vmul.f32 0.25, %v141_v46  ;;  %v132_v51 = vpop.xlane.xlu1 %131  ;;  %v1091_v45 = vmul.f32 %v2117_v41, %v2880_v54  ;;  %v2119_v29 = vpop.eup %2118  ;;  %2122 = vrsqrt.f32 %v195_v31  ;;  %v2171_v41 = vld [vmem:[%s3373_s0 + $0xe0] sm:$0xff]  ;;  %v126_v46 = vmul.f32 %v3231_v40, %v3231_v40 }
 0x313   :  { %v178_v63 = vmul.f32 0.25, %v132_v51  ;;  %v1094_v62 = vmul.f32 %v2119_v29, %v2874_v7  ;;  %v3242_v31 = vsub.f32 %v2171_v41, %v96_v2  ;;  %v3455_v29 = vpack.c.bf16 %v2991_v43, %v2988_v23  ;;  %v3458_v23 = vld [vmem:[#allocation8_spill] sm:$0xff]  ;;  %v3459_v43 = vld [vmem:[#allocation7_spill] sm:$0xff]  ;;  %v3473_v41 = vld [vmem:[#allocation22_spill] sm:$0xff] }
 0x314   :  { %v1101_v15 = vpack.c.bf16 %v1092_v33, %v1091_v45  ;;  %v197_v25 = vadd.f32 1e-05, %v181_v22  ;;  %v166_v22 = vsel %vm32_vm0, %v126_v46, 0.0  ;;  %v3454_v33 = vpack.c.bf16 %v3001_v61, %v2998_v27 }
 0x315   :  { %v2121_v24 = vpop.eup %2120  ;;  %v194_v32 = vadd.f32 1e-05, %v178_v63  ;;  %v608_v19 = vpop.permute.xlu0 %607  ;;  %v128_v51 = vmul.f32 %v3242_v31, %v3242_v31 }
 0x316   :  { %1948 = vmatprep.mubr.msk.bf16.mxu0 %vm32_vm0, %v1101_v15  ;;  %v138_v18 = vpop.xlane.xlu1 %137  ;;  %v1093_v34 = vmul.f32 %v2121_v24, %v2890_v5  ;;  %v95_v5 = vmul.f32 0.25, %v2995_v4  ;;  %v3456_v24 = vpack.c.bf16 %v3036_v38, %v3033_v60  ;;  %v3461_v60 = vpack.c.bf16 %v3083_v44, %v3080_v58 }
 0x317   :  { %2124 = vrsqrt.f32 %v194_v32  ;;  %v180_v48 = vmul.f32 0.25, %v138_v18  ;;  %v172_v45 = vsel %vm32_vm0, %v128_v51, 0.0 }
 0x318   :  { %v1102_v36 = vpack.c.bf16 %v1094_v62, %v1093_v34  ;;  %2126 = vrsqrt.f32 %v197_v25  ;;  %v3203_v47 = vsub.f32 %v2168_v1, %v95_v5  ;;  %v3457_v25 = vpack.c.bf16 %v3067_v8, %v3064_v26 }
 0x319   :  { %v196_v54 = vadd.f32 1e-05, %v180_v48  ;;  %v3460_v62 = vpack.c.bf16 %v3458_v23, %v3459_v43 }
 0x31a   :  { %1949 = vmatmul.mubr.msk.bf16.gmra.mrb[12].mxu0 %vm32_vm0, %v1102_v36  ;;  %v606_v49 = vpop.permute.xlu1 %605  ;;  %v3462_v36 = vld [vmem:[#allocation10_spill] sm:$0xff] }
 0x31b   :  { %2128 = vrsqrt.f32 %v196_v54  ;;  %1900 = vmatprep.mubr.msk.bf16.mxu1 %vm32_vm0, %v606_v49  ;;  %v3463_v54 = vld [vmem:[#allocation9_spill] sm:$0xff] }
 0x31c   :  { %1901 = vmatmul.mubr.msk.bf16.vlgmr.msra.gmra.mrb[0].mxu1 %vm32_vm0, %v608_v19  ;;  %v2123_v7 = vpop.eup %2122  ;;  %v3464_v49 = vpack.c.bf16 %v3462_v36, %v3463_v54 }
 0x31d   :  { %1917 = vmatpush3.bf16.msra.mxu1 %v771_v37  ;;  %v3210_v28 = vmul.f32 %v2123_v7, %v2899_v3  ;;  %v127_v3 = vmul.f32 %v3203_v47, %v3203_v47  ;;  %v3465_v37 = vld [vmem:[#allocation13_spill] sm:$0xff]  ;;  %v3467_v7 = vld [vmem:[#allocation12_spill] sm:$0xff] }
 0x31e   :  { %v3466_v19 = vpack.c.bf16 %v3107_v17, %v3465_v37 }
 0x321   :  { %v2125_v57 = vpop.eup %2124 }
 0x322   :  { %v3207_v35 = vmul.f32 %v2125_v57, %v2912_v0  ;;  %v2127_v59 = vpop.eup %2126  ;;  %v3468_v57 = vld [vmem:[#allocation11_spill] sm:$0xff] }
 0x323   :  { %v3221_v6 = vmul.f32 %v2127_v59, %v2906_v50  ;;  %v169_v50 = vsel %vm32_vm0, %v127_v3, 0.0  ;;  %v3469_v1 = vpack.c.bf16 %v3467_v7, %v3468_v57  ;;  %v3470_v59 = vld [vmem:[#allocation23_spill] sm:$0xff] }
 0x324   :  { %v242_v4 = vpack.c.bf16 %v3210_v28, %v3207_v35 }
 0x325   :  { %v2129_v21 = vpop.eup %2128 }
 0x326   :  { %v3224_v0 = vmul.f32 %v2129_v21, %v2922_v12  ;;  %v129_v12 = vmul.f32 %v3218_v11, %v3218_v11  ;;  %v3471_v21 = vld [vmem:[#allocation5_spill] sm:$0xff] }
 0x328   :  { %v243_v30 = vpack.c.bf16 %v3221_v6, %v3224_v0  ;;  %v175_v53 = vsel %vm32_vm0, %v129_v12, 0.0 }
 0x32b   :  { %170 = vadd.xlane.f32.xlu0 %v169_v50  ;;  %v3472_v50 = vld [vmem:[#allocation6_spill] sm:$0xff] }
 0x32f   :  { %176 = vadd.xlane.f32.xlu0 %v175_v53 }
 0x330   :  { %167 = vadd.xlane.f32.xlu1 %v166_v22 }
 0x334   :  { %173 = vadd.xlane.f32.xlu1 %v172_v45 }
 0x345   :  { %619 = vrot.lane.b32.xlu0 %v3454_v33, %s2196_s16  ;;  %617 = vrot.lane.b32.xlu1 %v3455_v29, %s2196_s16 }
 0x346   :  { %v147_v63 = vpop.xlane.xlu0 %146 }
 0x347   :  { %v183_v15 = vmul.f32 0.25, %v147_v63 }
 0x349   :  { %1599 = vrot.lane.b32.xlu1 %v3456_v24, %s2196_s16  ;;  %1603 = vrot.lane.b32.xlu0 %v3457_v25, %s2196_s16  ;;  %v199_v32 = vadd.f32 1e-05, %v183_v15 }
 0x34a   :  { %v153_v27 = vpop.xlane.xlu0 %152 }
 0x34b   :  { %v185_v61 = vmul.f32 0.25, %v153_v27  ;;  %v144_v18 = vpop.xlane.xlu1 %143  ;;  %2130 = vrsqrt.f32 %v199_v32 }
 0x34c   :  { %v182_v34 = vmul.f32 0.25, %v144_v18 }
 0x34d   :  { %1601 = vrot.lane.b32.xlu1 %v3460_v62, %s2196_s16  ;;  %1607 = vrot.lane.b32.xlu0 %v3461_v60, %s2196_s16  ;;  %v201_v38 = vadd.f32 1e-05, %v185_v61 }
 0x34e   :  { %v198_v48 = vadd.f32 1e-05, %v182_v34  ;;  %v612_v44 = vpop.permute.xlu0 %611 }
 0x34f   :  { %v150_v26 = vpop.xlane.xlu1 %149 }
 0x350   :  { %2132 = vrsqrt.f32 %v198_v48  ;;  %v184_v8 = vmul.f32 0.25, %v150_v26 }
 0x351   :  { %1605 = vrot.lane.b32.xlu1 %v3464_v49, %s2196_s16  ;;  %1611 = vrot.lane.b32.xlu0 %v3466_v19, %s2196_s16  ;;  %2134 = vrsqrt.f32 %v201_v38 }
 0x352   :  { %v200_v5 = vadd.f32 1e-05, %v184_v8 }
 0x353   :  { %v610_v58 = vpop.permute.xlu1 %609 }
 0x354   :  { %2136 = vrsqrt.f32 %v200_v5  ;;  %1904 = vmatprep.mubr.msk.bf16.mxu1 %vm32_vm0, %v610_v58 }
 0x355   :  { %1609 = vrot.lane.b32.xlu1 %v3469_v1, %s2196_s16  ;;  %1905 = vmatmul.mubr.msk.bf16.gmra.mrb[4].mxu1 %vm32_vm0, %v612_v44  ;;  %v2131_v55 = vpop.eup %2130 }
 0x356   :  { %v231_v16 = vmul.f32 %v2131_v55, %v3471_v21 }
 0x359   :  { %1613 = vrot.lane.b32.xlu1 %v1588_v39, %s2196_s16 }
 0x35a   :  { %v2133_v17 = vpop.eup %2132 }
 0x35b   :  { %v230_v20 = vmul.f32 %v2133_v17, %v3470_v59  ;;  %v2135_v3 = vpop.eup %2134 }
 0x35c   :  { %v3299_v46 = vmul.f32 %v2135_v3, %v3473_v41 }
 0x35d   :  { %v244_v14 = vpack.c.bf16 %v231_v16, %v230_v20 }
 0x35e   :  { %v2137_v2 = vpop.eup %2136 }
 0x35f   :  { %v3296_v12 = vmul.f32 %v2137_v2, %v3472_v50 }
 0x361   :  { %v245_v53 = vpack.c.bf16 %v3299_v46, %v3296_v12  ;;  %v3343_v12 = vld [vmem:[%s3375_s2] ss:$0 sm:$0xff]  ;;  %s2197_s2 = smov [#allocation2]  }
 0x362   :  { %s1799_s15 = sshll.u32 %s2197_s2, 4  ;;  %s1800_s15 = int_to_ptr.vmem [resolvable:$true] %s1799_s15 }
 0x363   :  { %s2172_s17 = scalar_lea.vmem %s1800_s15, 2048  ;;  %p2177_p1 = scmp.lt.s32.totalorder %s1800_s15, %s1800_s15 }
 0x364   :  { %p2173_p0 = scmp.ne.s32.totalorder %s1800_s15, %s2172_s17  ;;  %p2178_p2 = scmp.lt.s32.totalorder %s2172_s17, %s2172_s17 }
 0x366   :  { %p2179_p3 = por %p2178_p2, %p2177_p1 }
 0x368   :  { %p2180_p4 = pnand %p2179_p3, %p2173_p0 }
 0x37f   :  { %v159_v22 = vpop.xlane.xlu0 %158 }
 0x380   :  { %v187_v43 = vmul.f32 0.25, %v159_v22 }
 0x382   :  { %v203_v48 = vadd.f32 1e-05, %v187_v43 }
 0x383   :  { %v165_v52 = vpop.xlane.xlu0 %164 }
 0x384   :  { %v189_v13 = vmul.f32 0.25, %v165_v52  ;;  %v156_v39 = vpop.xlane.xlu1 %155 }
 0x385   :  { %v186_v34 = vmul.f32 0.25, %v156_v39 }
 0x386   :  { %v205_v51 = vadd.f32 1e-05, %v189_v13 }
 0x387   :  { %v616_v15 = vpop.permute.xlu0 %615  ;;  %v202_v60 = vadd.f32 1e-05, %v186_v34 }
 0x388   :  { %v162_v45 = vpop.xlane.xlu1 %161  ;;  %2138 = vrsqrt.f32 %v205_v51 }
 0x389   :  { %v188_v33 = vmul.f32 0.25, %v162_v45 }
 0x38b   :  { %v204_v29 = vadd.f32 1e-05, %v188_v33 }
 0x38c   :  { %v614_v63 = vpop.permute.xlu1 %613 }
 0x38d   :  { %2140 = vrsqrt.f32 %v204_v29  ;;  %1908 = vmatprep.mubr.msk.bf16.mxu1 %vm32_vm0, %v614_v63 }
 0x38e   :  { %1909 = vmatmul.mubr.msk.bf16.gmra.mrb[8].mxu1 %vm32_vm0, %v616_v15  ;;  %2142 = vrsqrt.f32 %v202_v60 }
 0x38f   :  { %2144 = vrsqrt.f32 %v203_v48 }
 0x392   :  { %v2139_v24 = vpop.eup %2138 }
 0x393   :  { %v237_v27 = vmul.f32 %v2139_v24, %v3141_v9 }
 0x397   :  { %v2141_v25 = vpop.eup %2140 }
 0x398   :  { %v236_v32 = vmul.f32 %v2141_v25, %v3163_v56  ;;  %v2143_v44 = vpop.eup %2142 }
 0x399   :  { %v2145_v28 = vpop.eup %2144  ;;  %v234_v7 = vmul.f32 %v2143_v44, %v3151_v42 }
 0x39a   :  { %v247_v61 = vpack.c.bf16 %v237_v27, %v236_v32  ;;  %v235_v57 = vmul.f32 %v2145_v28, %v3131_v10 }
 0x39c   :  { %v246_v6 = vpack.c.bf16 %v235_v57, %v234_v7 }
 0x3b8   :  { %v171_v18 = vpop.xlane.xlu0 %170 }
 0x3b9   :  { %v191_v54 = vmul.f32 0.25, %v171_v18 }
 0x3bb   :  { %v207_v49 = vadd.f32 1e-05, %v191_v54 }
 0x3bc   :  { %v177_v62 = vpop.xlane.xlu0 %176 }
 0x3bd   :  { %v168_v23 = vpop.xlane.xlu1 %167  ;;  %v193_v5 = vmul.f32 0.25, %v177_v62 }
 0x3be   :  { %v190_v26 = vmul.f32 0.25, %v168_v23 }
 0x3c0   :  { %v620_v36 = vpop.permute.xlu0 %619  ;;  %v206_v9 = vadd.f32 1e-05, %v190_v26 }
 0x3c1   :  { %v174_v38 = vpop.xlane.xlu1 %173 }
 0x3c2   :  { %v192_v37 = vmul.f32 0.25, %v174_v38  ;;  %2146 = vrsqrt.f32 %v206_v9 }
 0x3c3   :  { %2148 = vrsqrt.f32 %v207_v49 }
 0x3c4   :  { %v1604_v58 = vpop.permute.xlu0 %1603  ;;  %v208_v35 = vadd.f32 1e-05, %v192_v37 }
 0x3c5   :  { %v618_v8 = vpop.permute.xlu1 %617 }
 0x3c6   :  { %1912 = vmatprep.mubr.msk.bf16.mxu1 %vm32_vm0, %v618_v8  ;;  %2150 = vrsqrt.f32 %v208_v35 }
 0x3c7   :  { %1913 = vmatmul.mubr.msk.bf16.gmra.mrb[12].mxu1 %vm32_vm0, %v620_v36 }
 0x3c8   :  { %1918 = vmatprep.mubr.msk.bf16.mxu1 %vm32_vm0, %v242_v4  ;;  %v209_v4 = vadd.f32 1e-05, %v193_v5  ;;  %v1608_v55 = vpop.permute.xlu0 %1607 }
 0x3c9   :  { %v1600_v56 = vpop.permute.xlu1 %1599 }
 0x3ca   :  { %1954 = vmatprep.mubr.msk.bf16.mxu0 %vm32_vm0, %v1600_v56  ;;  %2152 = vrsqrt.f32 %v209_v4 }
 0x3cc   :  { %v2147_v0 = vpop.eup %2146  ;;  %v1612_v20 = vpop.permute.xlu0 %1611 }
 0x3cd   :  { %v1602_v19 = vpop.permute.xlu1 %1601  ;;  %v2149_v42 = vpop.eup %2148 }
 0x3ce   :  { %1955 = vmatmul.mubr.msk.bf16.vlgmr.msra.gmra.mrb[0].mxu0 %vm32_vm0, %v1602_v19  ;;  %v239_v10 = vmul.f32 %v2149_v42, %v3203_v47 }
 0x3cf   :  { %1919 = vmatmul.mubr.msk.bf16.vlgmr.msra.gmra.mrb[0].mxu1 %vm32_vm0, %v243_v30  ;;  %1958 = vmatprep.mubr.msk.bf16.mxu0 %vm32_vm0, %v1604_v58  ;;  %v238_v30 = vmul.f32 %v2147_v0, %v3231_v40 }
 0x3d0   :  { %1922 = vmatprep.mubr.msk.bf16.mxu1 %vm32_vm0, %v244_v14  ;;  %v2151_v59 = vpop.eup %2150 }
 0x3d1   :  { %v1606_v1 = vpop.permute.xlu1 %1605  ;;  %v248_v21 = vpack.c.bf16 %v239_v10, %v238_v30  ;;  %v240_v3 = vmul.f32 %v2151_v59, %v3242_v31 }
 0x3d4   :  { %v2153_v16 = vpop.eup %2152 }
 0x3d5   :  { %v1610_v17 = vpop.permute.xlu1 %1609  ;;  %v241_v14 = vmul.f32 %v2153_v16, %v3218_v11 }
 0x3d6   :  { %1959 = vmatmul.mubr.msk.bf16.gmra.mrb[4].mxu0 %vm32_vm0, %v1606_v1 }
 0x3d7   :  { %1923 = vmatmul.mubr.msk.bf16.gmra.mrb[4].mxu1 %vm32_vm0, %v245_v53  ;;  %1962 = vmatprep.mubr.msk.bf16.mxu0 %vm32_vm0, %v1608_v55  ;;  %v249_v2 = vpack.c.bf16 %v241_v14, %v240_v3 }
 0x3d8   :  { %1926 = vmatprep.mubr.msk.bf16.mxu1 %vm32_vm0, %v246_v6 }
 0x3d9   :  { %v1614_v40 = vpop.permute.xlu1 %1613 }
 0x3de   :  { %1963 = vmatmul.mubr.msk.bf16.gmra.mrb[8].mxu0 %vm32_vm0, %v1610_v17 }
 0x3df   :  { %1927 = vmatmul.mubr.msk.bf16.gmra.mrb[8].mxu1 %vm32_vm0, %v247_v61  ;;  %1966 = vmatprep.mubr.msk.bf16.mxu0 %vm32_vm0, %v1612_v20 }
 0x3e0   :  { %1930 = vmatprep.mubr.msk.bf16.mxu1 %vm32_vm0, %v248_v21 }
 0x3e6   :  { %1967 = vmatmul.mubr.msk.bf16.gmra.mrb[12].mxu0 %vm32_vm0, %v1614_v40 }
 0x3e7   :  { %1931 = vmatmul.mubr.msk.bf16.gmra.mrb[12].mxu1 %vm32_vm0, %v249_v2 }
 0x4a1   :  { %v1956_v47 = vpop.f32.mrb[0].mxu0 }
 0x4a2   :  { %v1920_v50 = vpop.f32.mrb[0].mxu1  ;;  %v1676_v41 = vpop.f32.mrb[1].mxu0 }
 0x4a3   :  { %v1970_v46 = vadd.f32 %v1956_v47, %v1920_v50  ;;  %v807_v53 = vpop.f32.mrb[1].mxu1  ;;  %v1957_v22 = vpop.f32.mrb[2].mxu0 }
 0x4a4   :  { %v1971_v31 = vadd.f32 %v1676_v41, %v807_v53  ;;  %v1921_v52 = vpop.f32.mrb[2].mxu1  ;;  %v1679_v11 = vpop.f32.mrb[3].mxu0 }
 0x4a5   :  { %v1764_v13 = vadd.f32 %v1970_v46, %v3343_v12  ;;  %v1972_v39 = vadd.f32 %v1957_v22, %v1921_v52  ;;  %v810_v51 = vpop.f32.mrb[3].mxu1 }
 0x4a6   :  { %v1762_v45 = vadd.f32 %v1971_v31, %v3343_v12  ;;  %v1973_v33 = vadd.f32 %v1679_v11, %v810_v51 }
 0x4a7   :  { %1780 = vst [vmem:[#allocation2 + $0x10] sm:$0xff] %v1764_v13  ;;  %v1765_v29 = vadd.f32 %v1972_v39, %v3343_v12 }
 0x4a8   :  { %1778 = vst [vmem:[#allocation2] sm:$0xff] %v1762_v45  ;;  %v1763_v63 = vadd.f32 %v1973_v33, %v3343_v12 }
 0x4a9   :  { %1781 = vst [vmem:[#allocation2 + $0x18] sm:$0xff] %v1765_v29  ;;  %v1960_v15 = vpop.f32.mrb[4].mxu0 }
 0x4aa   :  { %1779 = vst [vmem:[#allocation2 + $0x8] sm:$0xff] %v1763_v63  ;;  %v1924_v24 = vpop.f32.mrb[4].mxu1  ;;  %v1692_v25 = vpop.f32.mrb[5].mxu0 }
 0x4ab   :  { %v1974_v32 = vadd.f32 %v1960_v15, %v1924_v24  ;;  %v823_v27 = vpop.f32.mrb[5].mxu1  ;;  %v1961_v61 = vpop.f32.mrb[6].mxu0 }
 0x4ac   :  { %v1975_v18 = vadd.f32 %v1692_v25, %v823_v27  ;;  %v1925_v34 = vpop.f32.mrb[6].mxu1  ;;  %v1695_v23 = vpop.f32.mrb[7].mxu0 }
 0x4ad   :  { %v1768_v43 = vadd.f32 %v1974_v32, %v3343_v12  ;;  %v1976_v62 = vadd.f32 %v1961_v61, %v1925_v34  ;;  %v826_v60 = vpop.f32.mrb[7].mxu1 }
 0x4ae   :  { %v1766_v38 = vadd.f32 %v1975_v18, %v3343_v12  ;;  %v1977_v48 = vadd.f32 %v1695_v23, %v826_v60 }
 0x4af   :  { %1784 = vst [vmem:[#allocation2 + $0x30] sm:$0xff] %v1768_v43  ;;  %v1769_v26 = vadd.f32 %v1976_v62, %v3343_v12 }
 0x4b0   :  { %1782 = vst [vmem:[#allocation2 + $0x20] sm:$0xff] %v1766_v38  ;;  %v1767_v8 = vadd.f32 %v1977_v48, %v3343_v12 }
 0x4b1   :  { %1785 = vst [vmem:[#allocation2 + $0x38] sm:$0xff] %v1769_v26  ;;  %v1964_v36 = vpop.f32.mrb[8].mxu0 }
 0x4b2   :  { %1783 = vst [vmem:[#allocation2 + $0x28] sm:$0xff] %v1767_v8  ;;  %v1928_v54 = vpop.f32.mrb[8].mxu1  ;;  %v1708_v9 = vpop.f32.mrb[9].mxu0 }
 0x4b3   :  { %v1978_v56 = vadd.f32 %v1964_v36, %v1928_v54  ;;  %v839_v49 = vpop.f32.mrb[9].mxu1  ;;  %v1965_v37 = vpop.f32.mrb[10].mxu0 }
 0x4b4   :  { %v1979_v19 = vadd.f32 %v1708_v9, %v839_v49  ;;  %v1929_v5 = vpop.f32.mrb[10].mxu1  ;;  %v1711_v58 = vpop.f32.mrb[11].mxu0 }
 0x4b5   :  { %v1772_v44 = vadd.f32 %v1978_v56, %v3343_v12  ;;  %v1980_v35 = vadd.f32 %v1965_v37, %v1929_v5  ;;  %v842_v28 = vpop.f32.mrb[11].mxu1 }
 0x4b6   :  { %v1770_v4 = vadd.f32 %v1979_v19, %v3343_v12  ;;  %v1981_v7 = vadd.f32 %v1711_v58, %v842_v28 }
 0x4b7   :  { %1788 = vst [vmem:[#allocation2 + $0x50] sm:$0xff] %v1772_v44  ;;  %v1773_v57 = vadd.f32 %v1980_v35, %v3343_v12 }
 0x4b8   :  { %1786 = vst [vmem:[#allocation2 + $0x40] sm:$0xff] %v1770_v4  ;;  %v1771_v1 = vadd.f32 %v1981_v7, %v3343_v12 }
 0x4b9   :  { %1789 = vst [vmem:[#allocation2 + $0x58] sm:$0xff] %v1773_v57  ;;  %v1968_v55 = vpop.f32.mrb[12].mxu0 }
 0x4ba   :  { %1787 = vst [vmem:[#allocation2 + $0x48] sm:$0xff] %v1771_v1  ;;  %v1932_v6 = vpop.f32.mrb[12].mxu1  ;;  %v1724_v0 = vpop.f32.mrb[13].mxu0 }
 0x4bb   :  { %v1982_v42 = vadd.f32 %v1968_v55, %v1932_v6  ;;  %v855_v30 = vpop.f32.mrb[13].mxu1  ;;  %v1969_v10 = vpop.f32.mrb[14].mxu0 }
 0x4bc   :  { %v1983_v17 = vadd.f32 %v1724_v0, %v855_v30  ;;  %v1933_v59 = vpop.f32.mrb[14].mxu1  ;;  %v1727_v20 = vpop.f32.mrb[15].mxu0 }
 0x4bd   :  { %v1776_v21 = vadd.f32 %v1982_v42, %v3343_v12  ;;  %v1984_v16 = vadd.f32 %v1969_v10, %v1933_v59  ;;  %v858_v3 = vpop.f32.mrb[15].mxu1 }
 0x4be   :  { %v1774_v14 = vadd.f32 %v1983_v17, %v3343_v12  ;;  %v1985_v40 = vadd.f32 %v1727_v20, %v858_v3 }
 0x4bf   :  { %1792 = vst [vmem:[#allocation2 + $0x70] sm:$0xff] %v1776_v21  ;;  %v1777_v2 = vadd.f32 %v1984_v16, %v3343_v12 }
 0x4c0   :  { %1790 = vst [vmem:[#allocation2 + $0x60] sm:$0xff] %v1774_v14  ;;  %v1775_v47 = vadd.f32 %v1985_v40, %v3343_v12 }
 0x4c1   :  { %1793 = vst [vmem:[#allocation2 + $0x78] sm:$0xff] %v1777_v2 }
 0x4c2   :  { %1791 = vst [vmem:[#allocation2 + $0x68] sm:$0xff] %v1775_v47 }
 0x4c3   :  { %2183 = shalt.err (!%p2180_p4)
}
 0x4c4   :  { %s2184_s20 = scalar_lea.hbm %s3376_s3, 2048 }
 0x4c5   :  { %p2185_p5 = scmp.ne.s32.totalorder %s3376_s3, %s2184_s20  ;;  %p2188_p6 = scmp.lt.u32.totalorder %s2184_s20, %s3376_s3 }
 0x4c7   :  { %p2190_p7 = pnand %p2188_p6, %p2185_p5 }
 0x4c9   :  { %2193 = shalt.err (!%p2190_p7)
}
 0x4ca   :  { %s2198_s25 = smov 128   ;;  %s2199_s26 = smov 8  }
 0x4cb   :  { %1805 = dma.vmem_to_hbm [thread:$0]  %s1800_s15, 2048, %s3376_s3, [#allocation3], %s2198_s25, %s2198_s25, %s2199_s26  }
 0x4cc   :  { %2194 = dma.done.wait [#allocation3], 2048  }
 0x4cd   :  { %2195 = vsyncadd [#allocation3], 4294965248 }
 0x4ce   :  { %1809 = vsyncpa [#allocation3], 1 }

</bundles_post_ra>
